<compile_context>
chip_gen: v6e
topology: v6e:2x2x1
jax: 0.10.0
libtpu: 0.0.40
codegen_flags: <defaults>
</compile_context>

<pallas_src>
import jax
import jax.numpy as jnp
from jax import lax
from jax.experimental import pallas as pl
from jax.experimental.pallas import tpu as pltpu


def _round_up(v, m):
    return ((v + m - 1) // m) * m


# --------------------------- in-kernel helpers ------------------------------

def _conv3x3_im2col(xpad_ref, w_ref, b_ref, *, H, W, B, pad):
    """3x3 / stride-1 / pad-1 conv (+bias) over a lane-stacked batch of h-major
    flat (Cin, B*H*W) maps already staged (with zero-filled halos) in xpad_ref
    at lane offset `pad`.

    The im2col operand (9*Cin, B*H*W) is built in registers: 9 shifted slices,
    edge-masked, concatenated along sublanes, and fed to ONE MXU matmul.
    Cross-image leakage of the shifted slices is removed by the same edge mask.
    Returns (Cout, B*H*W) f32.
    """
    cin = xpad_ref.shape[0]
    HW = H * W
    BHW = B * HW

    idx = lax.broadcasted_iota(jnp.int32, (1, BHW), 1)      # flat stacked index
    if (HW & (HW - 1) == 0) and (W & (W - 1) == 0):         # power-of-two fast path
        pos = idx & (HW - 1)                                 # position within image
        hh = pos >> (W.bit_length() - 1)
        ww = pos & (W - 1)
    else:
        pos = idx % HW
        hh = pos // W
        ww = pos % W
    # shared validity masks (hoisted out of the tap loop)
    row_ok = {-1: hh >= 1, 0: None, 1: hh <= H - 2}
    col_ok = {-1: ww >= 1, 0: None, 1: ww <= W - 2}

    taps = []
    for dy in (-1, 0, 1):                                    # static, fully unrolled
        for dx in (-1, 0, 1):
            start = pad + dy * W + dx
            patch = xpad_ref[:, start:start + BHW]           # (Cin, BHW) shifted view
            rm, cm = row_ok[dy], col_ok[dx]
            mask = rm if cm is None else (cm if rm is None else rm & cm)
            taps.append(patch if mask is None else jnp.where(mask, patch, 0.0))
    pat = jnp.concatenate(taps, axis=0)                      # (9*Cin, BHW), in registers

    acc = jnp.dot(w_ref[...], pat,                           # (Cout,9Cin)@(9Cin,BHW)
                  preferred_element_type=jnp.float32)
    return acc + b_ref[...]                                  # (Cout, 1) broadcast


def _maxpool2x2(y, ybuf_ref, p_ref, *, H, W, B):
    """2x2 / stride-2 max-pool over a lane-stacked batch of h-major flat maps.

    Shifted reads give the 4 window candidates; one 0/1 selection matmul per
    image compacts to the even (h, w) anchors (stays lane dense, no strided
    gathers).  Reads that cross an image boundary only land on non-anchor
    positions, which the selection matrix never picks.
    Returns (C, B*(H/2)*(W/2)) f32.
    """
    C = y.shape[0]
    HW = H * W
    BHW = B * HW
    ybuf_ref[:, 0:BHW] = y
    ybuf_ref[:, BHW:BHW + W + 1] = jnp.zeros((C, W + 1), y.dtype)   # finite halo
    y0 = ybuf_ref[:, 0:BHW]
    y1 = ybuf_ref[:, 1:BHW + 1]
    yw = ybuf_ref[:, W:BHW + W]
    yw1 = ybuf_ref[:, W + 1:BHW + W + 1]
    m = jnp.maximum(jnp.maximum(y0, y1), jnp.maximum(yw, yw1))
    pieces = [jnp.dot(m[:, b * HW:(b + 1) * HW], p_ref[...],
                      preferred_element_type=jnp.float32) for b in range(B)]
    return pieces[0] if B == 1 else jnp.concatenate(pieces, axis=1)


# ----------------------------- host-side glue -------------------------------

def _pool_select_matrix(H, W):
    """(H*W, (H/2)*(W/2)) 0/1 matrix whose column j selects the flat index of
    the top-left (even-row, even-col) anchor of pooling window j."""
    Ho, Wo = H // 2, W // 2
    anchors = (2 * jnp.arange(Ho)[:, None] * W +
               2 * jnp.arange(Wo)[None, :]).reshape(-1)
    rows = jnp.arange(H * W)[:, None]
    return (rows == anchors[None, :]).astype(jnp.float32)


def init_params(key, in_ch=4, h=16, w=16, num_classes=10):
    c1, c2 = 8, 16
    k = jax.random.split(key, 6)
    return {
        "conv1_w": 0.1 * jax.random.normal(k[0], (3, 3, in_ch, c1), jnp.float32),
        "conv1_b": 0.1 * jax.random.normal(k[1], (c1,), jnp.float32),
        "conv2_w": 0.1 * jax.random.normal(k[2], (3, 3, c1, c2), jnp.float32),
        "conv2_b": 0.1 * jax.random.normal(k[3], (c2,), jnp.float32),
        "fc_w": 0.1 * jax.random.normal(
            k[4], (c2 * (h // 4) * (w // 4), num_classes), jnp.float32),
        "fc_b": 0.1 * jax.random.normal(k[5], (num_classes,), jnp.float32),
    }


def feature_extractor_forward(params, extracted_layers, x_nchw, *, block_n=2):
    """Mirror of FeatureExtractor.forward, fused into a single pallas_call."""
    N, CIN, H, W = x_nchw.shape
    C1 = params["conv1_b"].shape[0]
    C2 = params["conv2_b"].shape[0]
    NC = params["fc_b"].shape[0]
    assert H % 4 == 0 and W % 4 == 0, "two 2x2 pools need H, W divisible by 4"
    B = block_n
    assert N % B == 0, "batch must be divisible by block_n"
    NBLK = N // B
    H2, W2 = H // 2, W // 2
    H4, W4 = H2 // 2, W2 // 2
    HW1, HW2, HW4 = H * W, H2 * W2, H4 * W4
    PAD1 = _round_up(W + 1, 128)      # halo sized so staging stores stay lane aligned
    PAD2 = _round_up(W2 + 1, 128)

    layer_order = ["conv1", "relu1", "pool1", "conv2", "relu2", "pool2", "fc"]

    def collect(name):  # exact rule from FeatureExtractor.forward
        return extracted_layers is None or (name in extracted_layers and "fc" not in name)

    out_names = [n for n in layer_order if collect(n)]
    # The module always computes fc (even if its result is discarded); keep it
    # as a kernel output so the final-layer compute is exercised / not DCE'd.
    kernel_out_names = out_names if "fc" in out_names else out_names + ["fc"]
    n_out = len(kernel_out_names)

    # --- one-time operand packing (XLA glue, no per-layer HBM round trips) ---
    x_flat = x_nchw.reshape(N, CIN, HW1)          # NCHW row-major == (C, h*W+w)
    w1p = jnp.transpose(params["conv1_w"], (3, 0, 1, 2)).reshape(C1, 9 * CIN)
    b1p = params["conv1_b"].reshape(C1, 1)
    w2p = jnp.transpose(params["conv2_w"], (3, 0, 1, 2)).reshape(C2, 9 * C1)
    b2p = params["conv2_b"].reshape(C2, 1)
    P1 = _pool_select_matrix(H, W)                # (HW1, HW2), shared across batch
    P2 = _pool_select_matrix(H2, W2)              # (HW2, HW4)
    fcw = params["fc_w"]                          # (C2*HW4, NC), torch flatten order
    fcb = params["fc_b"].reshape(1, NC)

    # name -> (HBM out shape, out BlockSpec, host-side view back to NCHW)
    layer_meta = {
        "conv1": (jax.ShapeDtypeStruct((N, C1, HW1), jnp.float32),
                  pl.BlockSpec((B, C1, HW1), lambda i: (i, 0, 0)),
                  lambda a: a.reshape(N, C1, H, W)),
        "relu1": (jax.ShapeDtypeStruct((N, C1, HW1), jnp.float32),
                  pl.BlockSpec((B, C1, HW1), lambda i: (i, 0, 0)),
                  lambda a: a.reshape(N, C1, H, W)),
        "pool1": (jax.ShapeDtypeStruct((NBLK, C1, B * HW2), jnp.float32),
                  pl.BlockSpec((None, C1, B * HW2), lambda i: (i, 0, 0)),
                  lambda a: a.reshape(NBLK, C1, B, HW2).transpose(0, 2, 1, 3)
                             .reshape(N, C1, H2, W2)),
        "conv2": (jax.ShapeDtypeStruct((NBLK, C2, B * HW2), jnp.float32),
                  pl.BlockSpec((None, C2, B * HW2), lambda i: (i, 0, 0)),
                  lambda a: a.reshape(NBLK, C2, B, HW2).transpose(0, 2, 1, 3)
                             .reshape(N, C2, H2, W2)),
        "relu2": (jax.ShapeDtypeStruct((NBLK, C2, B * HW2), jnp.float32),
                  pl.BlockSpec((None, C2, B * HW2), lambda i: (i, 0, 0)),
                  lambda a: a.reshape(NBLK, C2, B, HW2).transpose(0, 2, 1, 3)
                             .reshape(N, C2, H2, W2)),
        "pool2": (jax.ShapeDtypeStruct((NBLK, B, C2 * HW4), jnp.float32),
                  pl.BlockSpec((None, B, C2 * HW4), lambda i: (i, 0, 0)),
                  lambda a: a.reshape(N, C2, H4, W4)),
        "fc":    (jax.ShapeDtypeStruct((NBLK, B, NC), jnp.float32),
                  pl.BlockSpec((None, B, NC), lambda i: (i, 0, 0)),
                  lambda a: a.reshape(N, NC)),
    }
    out_shapes = [layer_meta[n][0] for n in kernel_out_names]
    out_specs = [layer_meta[n][1] for n in kernel_out_names]

    in_specs = [
        pl.BlockSpec((B, CIN, HW1), lambda i: (i, 0, 0)),     # x (B images / grid step)
        pl.BlockSpec((C1, 9 * CIN), lambda i: (0, 0)),        # conv1 weight (packed)
        pl.BlockSpec((C1, 1), lambda i: (0, 0)),              # conv1 bias
        pl.BlockSpec((HW1, HW2), lambda i: (0, 0)),           # pool1 selection (per image)
        pl.BlockSpec((C2, 9 * C1), lambda i: (0, 0)),         # conv2 weight (packed)
        pl.BlockSpec((C2, 1), lambda i: (0, 0)),              # conv2 bias
        pl.BlockSpec((HW2, HW4), lambda i: (0, 0)),           # pool2 selection (per image)
        pl.BlockSpec((C2 * HW4, NC), lambda i: (0, 0)),       # fc weight
        pl.BlockSpec((1, NC), lambda i: (0, 0)),              # fc bias
    ]
    scratch_shapes = [
        pltpu.VMEM((CIN, B * HW1 + 2 * PAD1), jnp.float32),   # conv1 halo buffer
        pltpu.VMEM((C1, B * HW2 + 2 * PAD2), jnp.float32),    # conv2 halo buffer
        pltpu.VMEM((C1, B * HW1 + W + 1), jnp.float32),       # pool1 shift buffer
        pltpu.VMEM((C2, B * HW2 + W2 + 1), jnp.float32),      # pool2 shift buffer
    ]

    def kernel(x_ref, w1_ref, b1_ref, p1_ref, w2_ref, b2_ref, p2_ref,
               fcw_ref, fcb_ref, *refs):
        out_refs = refs[:n_out]
        xpad1, xpad2, ybuf1, ybuf2 = refs[n_out:]

        def maybe_store(name, value, per_image_hw=None):     # static (trace-time)
            if name not in kernel_out_names:
                return
            oref = out_refs[kernel_out_names.index(name)]
            if per_image_hw is None:
                oref[...] = value.astype(oref.dtype)
            else:                                            # de-stack batch on store
                for b in range(B):
                    oref[b] = value[:, b * per_image_hw:(b + 1) * per_image_hw
                                    ].astype(oref.dtype)

        # ---- stage conv1 input: lane-stacked batch, zero-filled halos ----
        xpad1[:, 0:PAD1] = jnp.zeros((CIN, PAD1), jnp.float32)
        xpad1[:, PAD1 + B * HW1:2 * PAD1 + B * HW1] = jnp.zeros((CIN, PAD1), jnp.float32)
        for b in range(B):
            xpad1[:, PAD1 + b * HW1:PAD1 + (b + 1) * HW1] = x_ref[b]

        # conv1 -> relu1 -> pool1 (everything stays in registers / VMEM)
        conv1 = _conv3x3_im2col(xpad1, w1_ref, b1_ref, H=H, W=W, B=B, pad=PAD1)
        maybe_store("conv1", conv1, per_image_hw=HW1)
        relu1 = jnp.maximum(conv1, 0.0)
        maybe_store("relu1", relu1, per_image_hw=HW1)
        pool1 = _maxpool2x2(relu1, ybuf1, p1_ref, H=H, W=W, B=B)       # (C1, B*HW2)
        maybe_store("pool1", pool1)

        # ---- stage conv2 input ----
        xpad2[:, 0:PAD2] = jnp.zeros((C1, PAD2), jnp.float32)
        xpad2[:, PAD2 + B * HW2:2 * PAD2 + B * HW2] = jnp.zeros((C1, PAD2), jnp.float32)
        xpad2[:, PAD2:PAD2 + B * HW2] = pool1

        # conv2 -> relu2 -> pool2
        conv2 = _conv3x3_im2col(xpad2, w2_ref, b2_ref, H=H2, W=W2, B=B, pad=PAD2)
        maybe_store("conv2", conv2)
        relu2 = jnp.maximum(conv2, 0.0)
        maybe_store("relu2", relu2)
        pool2 = _maxpool2x2(relu2, ybuf2, p2_ref, H=H2, W=W2, B=B)     # (C2, B*HW4)

        # ---- flatten each image to torch's NCHW .view(N, -1) row order ----
        rows = []
        for b in range(B):
            pieces = [pool2[c:c + 1, b * HW4:(b + 1) * HW4] for c in range(C2)]
            rows.append(jnp.concatenate(pieces, axis=1))               # (1, C2*HW4)
        x_fc = rows[0] if B == 1 else jnp.concatenate(rows, axis=0)    # (B, C2*HW4)
        maybe_store("pool2", x_fc)

        # fc on the MXU: (B, C2*HW4) @ (C2*HW4, NC)
        fc = (jnp.dot(x_fc, fcw_ref[...], preferred_element_type=jnp.float32)
              + fcb_ref[...])
        maybe_store("fc", fc)
        # TODO(synk): the original forward also print()s every layer name; omitted.

    outs = pl.pallas_call(
        kernel,
        out_shape=out_shapes,
        grid=(NBLK,),
        in_specs=in_specs,
        out_specs=out_specs,
        scratch_shapes=scratch_shapes,
        compiler_params=pltpu.CompilerParams(dimension_semantics=("parallel",)),
    )(x_flat, w1p, b1p, P1, w2p, b2p, P2, fcw, fcb)

    return {name: layer_meta[name][2](outs[i])
            for i, name in enumerate(kernel_out_names) if collect(name)}


# -------------------------------- reference ---------------------------------

def reference_forward(params, extracted_layers, x_nchw):
    x = jnp.transpose(x_nchw, (0, 2, 3, 1))   # NHWC for lax.conv

    def conv(x, w, b):
        y = lax.conv_general_dilated(
            x, w, window_strides=(1, 1), padding="SAME",
            dimension_numbers=("NHWC", "HWIO", "NHWC"),
            precision=lax.Precision.HIGHEST)
        return y + b

    def pool(x):
        return lax.reduce_window(x, -jnp.inf, lax.max,
                                 (1, 2, 2, 1), (1, 2, 2, 1), "VALID")

    steps = [
        ("conv1", lambda x: conv(x, params["conv1_w"], params["conv1_b"])),
        ("relu1", lambda x: jnp.maximum(x, 0.0)),
        ("pool1", pool),
        ("conv2", lambda x: conv(x, params["conv2_w"], params["conv2_b"])),
        ("relu2", lambda x: jnp.maximum(x, 0.0)),
        ("pool2", pool),
        ("fc",    lambda x: jnp.dot(x, params["fc_w"],
                                    precision=lax.Precision.HIGHEST) + params["fc_b"]),
    ]
    outputs = {}
    for name, fn in steps:
        if "fc" in name:
            x = jnp.transpose(x, (0, 3, 1, 2)).reshape(x.shape[0], -1)
        x = fn(x)
        if extracted_layers is None or (name in extracted_layers and "fc" not in name):
            outputs[name] = jnp.transpose(x, (0, 3, 1, 2)) if x.ndim == 4 else x
    return outputs


# ---------------------------------- main -------------------------------------

if __name__ == "__main__":
    key = jax.random.PRNGKey(0)
    k_x, k_p = jax.random.split(key)

    # N=4 with block_n=2 -> 2 images per grid step (dense 128-lane stage-2 maps)
    # and a 2-step grid so both v7x TensorCores get work.
    N, C, H, W = 4, 4, 16, 16
    x = jax.random.normal(k_x, (N, C, H, W), jnp.float32)        # NCHW like PyTorch
    params = init_params(k_p, in_ch=C, h=H, w=W, num_classes=10)

    # case 1: explicit extracted layers ('fc' is listed but never collected)
    extracted_layers = ["conv1", "pool1", "relu2", "fc"]
    outs = feature_extractor_forward(params, extracted_layers, x, block_n=2)
    outs = jax.tree_util.tree_map(jax.block_until_ready, outs)
    assert set(outs.keys()) == {"conv1", "pool1", "relu2"}
    assert outs["conv1"].shape == (N, 8, H, W)
    assert outs["pool1"].shape == (N, 8, H // 2, W // 2)
    assert outs["relu2"].shape == (N, 16, H // 2, W // 2)
    ref = reference_forward(params, extracted_layers, x)
    for name in outs:
        assert jnp.allclose(outs[name], ref[name], rtol=2e-4, atol=2e-4), name

    # case 2: extracted_layers=None -> every layer (including fc) is collected
    outs_all = feature_extractor_forward(params, None, x, block_n=2)
    outs_all = jax.tree_util.tree_map(jax.block_until_ready, outs_all)
    ref_all = reference_forward(params, None, x)
    assert set(outs_all.keys()) == set(ref_all.keys())
    for name in outs_all:
        assert jnp.allclose(outs_all[name], ref_all[name], rtol=2e-4, atol=2e-4), name

    print("KERNEL_OK")
</pallas_src>

<mosaic_0001>
module attributes {stable_mosaic.version = 11 : i64} {
  func.func @kernel(%arg0: i32, %arg1: memref<2x4x256xf32, #tpu.memory_space<vmem>>, %arg2: memref<8x36xf32, #tpu.memory_space<vmem>>, %arg3: memref<8x1xf32, #tpu.memory_space<vmem>>, %arg4: memref<256x64xf32, #tpu.memory_space<vmem>>, %arg5: memref<16x72xf32, #tpu.memory_space<vmem>>, %arg6: memref<16x1xf32, #tpu.memory_space<vmem>>, %arg7: memref<64x16xf32, #tpu.memory_space<vmem>>, %arg8: memref<256x10xf32, #tpu.memory_space<vmem>>, %arg9: memref<1x10xf32, #tpu.memory_space<vmem>>, %arg10: memref<2x8x256xf32, #tpu.memory_space<vmem>>, %arg11: memref<1x8x128xf32, #tpu.memory_space<vmem>>, %arg12: memref<1x16x128xf32, #tpu.memory_space<vmem>>, %arg13: memref<1x2x10xf32, #tpu.memory_space<vmem>>, %arg14: memref<4x768xf32, #tpu.memory_space<vmem>>, %arg15: memref<8x384xf32, #tpu.memory_space<vmem>>, %arg16: memref<8x529xf32, #tpu.memory_space<vmem>>, %arg17: memref<16x137xf32, #tpu.memory_space<vmem>>) attributes {dimension_semantics = [#tpu.dimension_semantics<parallel>], iteration_bounds = array<i64: 2>, scalar_prefetch = 0 : i64, scratch_operands = 4 : i64, tpu.core_type = #tpu.core_type<tc>, window_params = [{transform_indices = @transform_0, window_bounds = array<i64: 2, 4, 256>}, {pipeline_mode = #tpu.pipeline_mode<synchronous>, transform_indices = @transform_1, window_bounds = array<i64: 8, 36>}, {pipeline_mode = #tpu.pipeline_mode<synchronous>, transform_indices = @transform_2, window_bounds = array<i64: 8, 1>}, {pipeline_mode = #tpu.pipeline_mode<synchronous>, transform_indices = @transform_3, window_bounds = array<i64: 256, 64>}, {pipeline_mode = #tpu.pipeline_mode<synchronous>, transform_indices = @transform_4, window_bounds = array<i64: 16, 72>}, {pipeline_mode = #tpu.pipeline_mode<synchronous>, transform_indices = @transform_5, window_bounds = array<i64: 16, 1>}, {pipeline_mode = #tpu.pipeline_mode<synchronous>, transform_indices = @transform_6, window_bounds = array<i64: 64, 16>}, {pipeline_mode = #tpu.pipeline_mode<synchronous>, transform_indices = @transform_7, window_bounds = array<i64: 256, 10>}, {pipeline_mode = #tpu.pipeline_mode<synchronous>, transform_indices = @transform_8, window_bounds = array<i64: 1, 10>}, {transform_indices = @transform_9, window_bounds = array<i64: 2, 8, 256>}, {transform_indices = @transform_10, window_bounds = array<i64: 1, 8, 128>}, {transform_indices = @transform_11, window_bounds = array<i64: 1, 16, 128>}, {transform_indices = @transform_12, window_bounds = array<i64: 1, 2, 10>}]} {
    %cst = arith.constant 0.000000e+00 : f32
    %0 = vector.broadcast %cst : f32 to vector<4x128xf32>
    %c0 = arith.constant 0 : index
    %c0_0 = arith.constant 0 : index
    %1 = vector.load %arg14[%c0, %c0_0] : memref<4x768xf32, #tpu.memory_space<vmem>>, vector<4x128xf32>
    tpu.vector_store %arg14[%c0, %c0_0], %0 {strides = array<i32>} : memref<4x768xf32, #tpu.memory_space<vmem>>, vector<4x128xf32>,
    %cst_1 = arith.constant 0.000000e+00 : f32
    %2 = vector.broadcast %cst_1 : f32 to vector<4x128xf32>
    %c0_2 = arith.constant 0 : index
    %c640 = arith.constant 640 : index
    %3 = vector.load %arg14[%c0_2, %c640] : memref<4x768xf32, #tpu.memory_space<vmem>>, vector<4x128xf32>
    tpu.vector_store %arg14[%c0_2, %c640], %2 {strides = array<i32>} : memref<4x768xf32, #tpu.memory_space<vmem>>, vector<4x128xf32>,
    %c0_3 = arith.constant 0 : index
    %c0_4 = arith.constant 0 : index
    %c0_5 = arith.constant 0 : index
    %4 = vector.load %arg1[%c0_3, %c0_4, %c0_5] : memref<2x4x256xf32, #tpu.memory_space<vmem>>, vector<1x4x256xf32>
    %5 = vector.shape_cast %4 : vector<1x4x256xf32> to vector<4x256xf32>
    %c0_6 = arith.constant 0 : index
    %c128 = arith.constant 128 : index
    %6 = vector.load %arg14[%c0_6, %c128] : memref<4x768xf32, #tpu.memory_space<vmem>>, vector<4x256xf32>
    tpu.vector_store %arg14[%c0_6, %c128], %5 {strides = array<i32>} : memref<4x768xf32, #tpu.memory_space<vmem>>, vector<4x256xf32>,
    %c1 = arith.constant 1 : index
    %c0_7 = arith.constant 0 : index
    %c0_8 = arith.constant 0 : index
    %7 = vector.load %arg1[%c1, %c0_7, %c0_8] : memref<2x4x256xf32, #tpu.memory_space<vmem>>, vector<1x4x256xf32>
    %8 = vector.shape_cast %7 : vector<1x4x256xf32> to vector<4x256xf32>
    %c0_9 = arith.constant 0 : index
    %c384 = arith.constant 384 : index
    %9 = vector.load %arg14[%c0_9, %c384] : memref<4x768xf32, #tpu.memory_space<vmem>>, vector<4x256xf32>
    tpu.vector_store %arg14[%c0_9, %c384], %8 {strides = array<i32>} : memref<4x768xf32, #tpu.memory_space<vmem>>, vector<4x256xf32>,
    %10 = tpu.iota {dimensions = array<i32: 1>} : vector<1x512xi32>
    %c255_i32 = arith.constant 255 : i32
    %11 = vector.broadcast %c255_i32 : i32 to vector<1x512xi32>
    %12 = arith.andi %10, %11 : vector<1x512xi32>
    %c4_i32 = arith.constant 4 : i32
    %13 = vector.broadcast %c4_i32 : i32 to vector<1x512xi32>
    %14 = arith.shrsi %12, %13 : vector<1x512xi32>
    %c15_i32 = arith.constant 15 : i32
    %15 = vector.broadcast %c15_i32 : i32 to vector<1x512xi32>
    %16 = arith.andi %12, %15 : vector<1x512xi32>
    %c1_i32 = arith.constant 1 : i32
    %17 = vector.broadcast %c1_i32 : i32 to vector<1x512xi32>
    %18 = arith.cmpi sge, %14, %17 : vector<1x512xi32>
    %c14_i32 = arith.constant 14 : i32
    %19 = vector.broadcast %c14_i32 : i32 to vector<1x512xi32>
    %20 = arith.cmpi sle, %14, %19 : vector<1x512xi32>
    %c1_i32_10 = arith.constant 1 : i32
    %21 = vector.broadcast %c1_i32_10 : i32 to vector<1x512xi32>
    %22 = arith.cmpi sge, %16, %21 : vector<1x512xi32>
    %c14_i32_11 = arith.constant 14 : i32
    %23 = vector.broadcast %c14_i32_11 : i32 to vector<1x512xi32>
    %24 = arith.cmpi sle, %16, %23 : vector<1x512xi32>
    %c0_12 = arith.constant 0 : index
    %c111 = arith.constant 111 : index
    %25 = vector.load %arg14[%c0_12, %c111] : memref<4x768xf32, #tpu.memory_space<vmem>>, vector<4x512xf32>
    %26 = arith.andi %18, %22 : vector<1x512xi1>
    %cst_13 = arith.constant 0.000000e+00 : f32
    %27 = vector.shape_cast %26 : vector<1x512xi1> to vector<1x512xi1>
    %28 = vector.broadcast %27 : vector<1x512xi1> to vector<4x512xi1>
    %29 = vector.broadcast %cst_13 : f32 to vector<4x512xf32>
    %30 = arith.select %28, %25, %29 : vector<4x512xi1>, vector<4x512xf32>
    %c0_14 = arith.constant 0 : index
    %c112 = arith.constant 112 : index
    %31 = vector.load %arg14[%c0_14, %c112] : memref<4x768xf32, #tpu.memory_space<vmem>>, vector<4x512xf32>
    %cst_15 = arith.constant 0.000000e+00 : f32
    %32 = vector.shape_cast %18 : vector<1x512xi1> to vector<1x512xi1>
    %33 = vector.broadcast %32 : vector<1x512xi1> to vector<4x512xi1>
    %34 = vector.broadcast %cst_15 : f32 to vector<4x512xf32>
    %35 = arith.select %33, %31, %34 : vector<4x512xi1>, vector<4x512xf32>
    %c0_16 = arith.constant 0 : index
    %c113 = arith.constant 113 : index
    %36 = vector.load %arg14[%c0_16, %c113] : memref<4x768xf32, #tpu.memory_space<vmem>>, vector<4x512xf32>
    %37 = arith.andi %18, %24 : vector<1x512xi1>
    %cst_17 = arith.constant 0.000000e+00 : f32
    %38 = vector.shape_cast %37 : vector<1x512xi1> to vector<1x512xi1>
    %39 = vector.broadcast %38 : vector<1x512xi1> to vector<4x512xi1>
    %40 = vector.broadcast %cst_17 : f32 to vector<4x512xf32>
    %41 = arith.select %39, %36, %40 : vector<4x512xi1>, vector<4x512xf32>
    %c0_18 = arith.constant 0 : index
    %c127 = arith.constant 127 : index
    %42 = vector.load %arg14[%c0_18, %c127] : memref<4x768xf32, #tpu.memory_space<vmem>>, vector<4x512xf32>
    %cst_19 = arith.constant 0.000000e+00 : f32
    %43 = vector.shape_cast %22 : vector<1x512xi1> to vector<1x512xi1>
    %44 = vector.broadcast %43 : vector<1x512xi1> to vector<4x512xi1>
    %45 = vector.broadcast %cst_19 : f32 to vector<4x512xf32>
    %46 = arith.select %44, %42, %45 : vector<4x512xi1>, vector<4x512xf32>
    %c0_20 = arith.constant 0 : index
    %c128_21 = arith.constant 128 : index
    %47 = vector.load %arg14[%c0_20, %c128_21] : memref<4x768xf32, #tpu.memory_space<vmem>>, vector<4x512xf32>
    %c0_22 = arith.constant 0 : index
    %c129 = arith.constant 129 : index
    %48 = vector.load %arg14[%c0_22, %c129] : memref<4x768xf32, #tpu.memory_space<vmem>>, vector<4x512xf32>
    %cst_23 = arith.constant 0.000000e+00 : f32
    %49 = vector.shape_cast %24 : vector<1x512xi1> to vector<1x512xi1>
    %50 = vector.broadcast %49 : vector<1x512xi1> to vector<4x512xi1>
    %51 = vector.broadcast %cst_23 : f32 to vector<4x512xf32>
    %52 = arith.select %50, %48, %51 : vector<4x512xi1>, vector<4x512xf32>
    %c0_24 = arith.constant 0 : index
    %c143 = arith.constant 143 : index
    %53 = vector.load %arg14[%c0_24, %c143] : memref<4x768xf32, #tpu.memory_space<vmem>>, vector<4x512xf32>
    %54 = arith.andi %20, %22 : vector<1x512xi1>
    %cst_25 = arith.constant 0.000000e+00 : f32
    %55 = vector.shape_cast %54 : vector<1x512xi1> to vector<1x512xi1>
    %56 = vector.broadcast %55 : vector<1x512xi1> to vector<4x512xi1>
    %57 = vector.broadcast %cst_25 : f32 to vector<4x512xf32>
    %58 = arith.select %56, %53, %57 : vector<4x512xi1>, vector<4x512xf32>
    %c0_26 = arith.constant 0 : index
    %c144 = arith.constant 144 : index
    %59 = vector.load %arg14[%c0_26, %c144] : memref<4x768xf32, #tpu.memory_space<vmem>>, vector<4x512xf32>
    %cst_27 = arith.constant 0.000000e+00 : f32
    %60 = vector.shape_cast %20 : vector<1x512xi1> to vector<1x512xi1>
    %61 = vector.broadcast %60 : vector<1x512xi1> to vector<4x512xi1>
    %62 = vector.broadcast %cst_27 : f32 to vector<4x512xf32>
    %63 = arith.select %61, %59, %62 : vector<4x512xi1>, vector<4x512xf32>
    %c0_28 = arith.constant 0 : index
    %c145 = arith.constant 145 : index
    %64 = vector.load %arg14[%c0_28, %c145] : memref<4x768xf32, #tpu.memory_space<vmem>>, vector<4x512xf32>
    %65 = arith.andi %20, %24 : vector<1x512xi1>
    %cst_29 = arith.constant 0.000000e+00 : f32
    %66 = vector.shape_cast %65 : vector<1x512xi1> to vector<1x512xi1>
    %67 = vector.broadcast %66 : vector<1x512xi1> to vector<4x512xi1>
    %68 = vector.broadcast %cst_29 : f32 to vector<4x512xf32>
    %69 = arith.select %67, %64, %68 : vector<4x512xi1>, vector<4x512xf32>
    %70 = tpu.concatenate %30, %35, %41, %46, %47, %52, %58, %63, %69 in 0 : vector<4x512xf32>, vector<4x512xf32>, vector<4x512xf32>, vector<4x512xf32>, vector<4x512xf32>, vector<4x512xf32>, vector<4x512xf32>, vector<4x512xf32>, vector<4x512xf32> -> vector<36x512xf32>
    %c0_30 = arith.constant 0 : index
    %c0_31 = arith.constant 0 : index
    %71 = vector.load %arg2[%c0_30, %c0_31] : memref<8x36xf32, #tpu.memory_space<vmem>>, vector<8x36xf32>
    %cst_32 = arith.constant dense<0.000000e+00> : vector<8x512xf32>
    %72 = tpu.matmul %71, %70, %cst_32 {dimension_numbers = #tpu.dot_dimension_numbers<[1], [0], [0], [1], [0, 0, 1, 1], [], []>} : vector<8x36xf32>, vector<36x512xf32>, vector<8x512xf32> -> vector<8x512xf32>
    %c0_33 = arith.constant 0 : index
    %c0_34 = arith.constant 0 : index
    %73 = vector.load %arg3[%c0_33, %c0_34] : memref<8x1xf32, #tpu.memory_space<vmem>>, vector<8x1xf32>
    %74 = vector.broadcast %73 : vector<8x1xf32> to vector<8x512xf32>
    %75 = arith.addf %72, %74 : vector<8x512xf32>
    %76 = vector.extract_strided_slice %75 {offsets = [0, 0], sizes = [8, 256], strides = [1, 1]} : vector<8x512xf32> to vector<8x256xf32>
    %c0_35 = arith.constant 0 : index
    %c0_36 = arith.constant 0 : index
    %c0_37 = arith.constant 0 : index
    %77 = vector.load %arg10[%c0_35, %c0_36, %c0_37] : memref<2x8x256xf32, #tpu.memory_space<vmem>>, vector<1x8x256xf32>
    %78 = vector.shape_cast %77 : vector<1x8x256xf32> to vector<8x256xf32>
    %79 = vector.shape_cast %76 : vector<8x256xf32> to vector<1x8x256xf32>
    tpu.vector_store %arg10[%c0_35, %c0_36, %c0_37], %79 {strides = array<i32>} : memref<2x8x256xf32, #tpu.memory_space<vmem>>, vector<1x8x256xf32>,
    %80 = vector.extract_strided_slice %75 {offsets = [0, 256], sizes = [8, 256], strides = [1, 1]} : vector<8x512xf32> to vector<8x256xf32>
    %c1_38 = arith.constant 1 : index
    %c0_39 = arith.constant 0 : index
    %c0_40 = arith.constant 0 : index
    %81 = vector.load %arg10[%c1_38, %c0_39, %c0_40] : memref<2x8x256xf32, #tpu.memory_space<vmem>>, vector<1x8x256xf32>
    %82 = vector.shape_cast %81 : vector<1x8x256xf32> to vector<8x256xf32>
    %83 = vector.shape_cast %80 : vector<8x256xf32> to vector<1x8x256xf32>
    tpu.vector_store %arg10[%c1_38, %c0_39, %c0_40], %83 {strides = array<i32>} : memref<2x8x256xf32, #tpu.memory_space<vmem>>, vector<1x8x256xf32>,
    %cst_41 = arith.constant 0.000000e+00 : f32
    %84 = vector.broadcast %cst_41 : f32 to vector<8x512xf32>
    %85 = arith.maximumf %75, %84 : vector<8x512xf32>
    %c0_42 = arith.constant 0 : index
    %c0_43 = arith.constant 0 : index
    %86 = vector.load %arg16[%c0_42, %c0_43] : memref<8x529xf32, #tpu.memory_space<vmem>>, vector<8x512xf32>
    tpu.vector_store %arg16[%c0_42, %c0_43], %85 {strides = array<i32>} : memref<8x529xf32, #tpu.memory_space<vmem>>, vector<8x512xf32>,
    %cst_44 = arith.constant 0.000000e+00 : f32
    %87 = vector.broadcast %cst_44 : f32 to vector<8x17xf32>
    %c0_45 = arith.constant 0 : index
    %c512 = arith.constant 512 : index
    %88 = vector.load %arg16[%c0_45, %c512] : memref<8x529xf32, #tpu.memory_space<vmem>>, vector<8x17xf32>
    tpu.vector_store %arg16[%c0_45, %c512], %87 {strides = array<i32>} : memref<8x529xf32, #tpu.memory_space<vmem>>, vector<8x17xf32>,
    %c0_46 = arith.constant 0 : index
    %c0_47 = arith.constant 0 : index
    %89 = vector.load %arg16[%c0_46, %c0_47] : memref<8x529xf32, #tpu.memory_space<vmem>>, vector<8x512xf32>
    %c0_48 = arith.constant 0 : index
    %c1_49 = arith.constant 1 : index
    %90 = vector.load %arg16[%c0_48, %c1_49] : memref<8x529xf32, #tpu.memory_space<vmem>>, vector<8x512xf32>
    %c0_50 = arith.constant 0 : index
    %c16 = arith.constant 16 : index
    %91 = vector.load %arg16[%c0_50, %c16] : memref<8x529xf32, #tpu.memory_space<vmem>>, vector<8x512xf32>
    %c0_51 = arith.constant 0 : index
    %c17 = arith.constant 17 : index
    %92 = vector.load %arg16[%c0_51, %c17] : memref<8x529xf32, #tpu.memory_space<vmem>>, vector<8x512xf32>
    %93 = arith.maximumf %89, %90 : vector<8x512xf32>
    %94 = arith.maximumf %91, %92 : vector<8x512xf32>
    %95 = arith.maximumf %93, %94 : vector<8x512xf32>
    %96 = vector.extract_strided_slice %95 {offsets = [0, 0], sizes = [8, 256], strides = [1, 1]} : vector<8x512xf32> to vector<8x256xf32>
    %c0_52 = arith.constant 0 : index
    %c0_53 = arith.constant 0 : index
    %97 = vector.load %arg4[%c0_52, %c0_53] : memref<256x64xf32, #tpu.memory_space<vmem>>, vector<256x64xf32>
    %cst_54 = arith.constant dense<0.000000e+00> : vector<8x64xf32>
    %98 = tpu.matmul %96, %97, %cst_54 {dimension_numbers = #tpu.dot_dimension_numbers<[1], [0], [0], [1], [0, 0, 1, 1], [], []>} : vector<8x256xf32>, vector<256x64xf32>, vector<8x64xf32> -> vector<8x64xf32>
    %99 = vector.extract_strided_slice %95 {offsets = [0, 256], sizes = [8, 256], strides = [1, 1]} : vector<8x512xf32> to vector<8x256xf32>
    %c0_55 = arith.constant 0 : index
    %c0_56 = arith.constant 0 : index
    %100 = vector.load %arg4[%c0_55, %c0_56] : memref<256x64xf32, #tpu.memory_space<vmem>>, vector<256x64xf32>
    %cst_57 = arith.constant dense<0.000000e+00> : vector<8x64xf32>
    %101 = tpu.matmul %99, %100, %cst_57 {dimension_numbers = #tpu.dot_dimension_numbers<[1], [0], [0], [1], [0, 0, 1, 1], [], []>} : vector<8x256xf32>, vector<256x64xf32>, vector<8x64xf32> -> vector<8x64xf32>
    %102 = tpu.concatenate %98, %101 in 1 : vector<8x64xf32>, vector<8x64xf32> -> vector<8x128xf32>
    %c0_58 = arith.constant 0 : index
    %c0_59 = arith.constant 0 : index
    %c0_60 = arith.constant 0 : index
    %103 = vector.load %arg11[%c0_58, %c0_59, %c0_60] : memref<1x8x128xf32, #tpu.memory_space<vmem>>, vector<1x8x128xf32>
    %104 = vector.shape_cast %103 : vector<1x8x128xf32> to vector<8x128xf32>
    %105 = vector.shape_cast %102 : vector<8x128xf32> to vector<1x8x128xf32>
    tpu.vector_store %arg11[%c0_58, %c0_59, %c0_60], %105 {strides = array<i32>} : memref<1x8x128xf32, #tpu.memory_space<vmem>>, vector<1x8x128xf32>,
    %cst_61 = arith.constant 0.000000e+00 : f32
    %106 = vector.broadcast %cst_61 : f32 to vector<8x128xf32>
    %c0_62 = arith.constant 0 : index
    %c0_63 = arith.constant 0 : index
    %107 = vector.load %arg15[%c0_62, %c0_63] : memref<8x384xf32, #tpu.memory_space<vmem>>, vector<8x128xf32>
    tpu.vector_store %arg15[%c0_62, %c0_63], %106 {strides = array<i32>} : memref<8x384xf32, #tpu.memory_space<vmem>>, vector<8x128xf32>,
    %cst_64 = arith.constant 0.000000e+00 : f32
    %108 = vector.broadcast %cst_64 : f32 to vector<8x128xf32>
    %c0_65 = arith.constant 0 : index
    %c256 = arith.constant 256 : index
    %109 = vector.load %arg15[%c0_65, %c256] : memref<8x384xf32, #tpu.memory_space<vmem>>, vector<8x128xf32>
    tpu.vector_store %arg15[%c0_65, %c256], %108 {strides = array<i32>} : memref<8x384xf32, #tpu.memory_space<vmem>>, vector<8x128xf32>,
    %c0_66 = arith.constant 0 : index
    %c128_67 = arith.constant 128 : index
    %110 = vector.load %arg15[%c0_66, %c128_67] : memref<8x384xf32, #tpu.memory_space<vmem>>, vector<8x128xf32>
    tpu.vector_store %arg15[%c0_66, %c128_67], %102 {strides = array<i32>} : memref<8x384xf32, #tpu.memory_space<vmem>>, vector<8x128xf32>,
    %111 = tpu.iota {dimensions = array<i32: 1>} : vector<1x128xi32>
    %c63_i32 = arith.constant 63 : i32
    %112 = vector.broadcast %c63_i32 : i32 to vector<1x128xi32>
    %113 = arith.andi %111, %112 : vector<1x128xi32>
    %c3_i32 = arith.constant 3 : i32
    %114 = vector.broadcast %c3_i32 : i32 to vector<1x128xi32>
    %115 = arith.shrsi %113, %114 : vector<1x128xi32>
    %c7_i32 = arith.constant 7 : i32
    %116 = vector.broadcast %c7_i32 : i32 to vector<1x128xi32>
    %117 = arith.andi %113, %116 : vector<1x128xi32>
    %c1_i32_68 = arith.constant 1 : i32
    %118 = vector.broadcast %c1_i32_68 : i32 to vector<1x128xi32>
    %119 = arith.cmpi sge, %115, %118 : vector<1x128xi32>
    %c6_i32 = arith.constant 6 : i32
    %120 = vector.broadcast %c6_i32 : i32 to vector<1x128xi32>
    %121 = arith.cmpi sle, %115, %120 : vector<1x128xi32>
    %c1_i32_69 = arith.constant 1 : i32
    %122 = vector.broadcast %c1_i32_69 : i32 to vector<1x128xi32>
    %123 = arith.cmpi sge, %117, %122 : vector<1x128xi32>
    %c6_i32_70 = arith.constant 6 : i32
    %124 = vector.broadcast %c6_i32_70 : i32 to vector<1x128xi32>
    %125 = arith.cmpi sle, %117, %124 : vector<1x128xi32>
    %c0_71 = arith.constant 0 : index
    %c119 = arith.constant 119 : index
    %126 = vector.load %arg15[%c0_71, %c119] : memref<8x384xf32, #tpu.memory_space<vmem>>, vector<8x128xf32>
    %127 = arith.andi %119, %123 : vector<1x128xi1>
    %cst_72 = arith.constant 0.000000e+00 : f32
    %128 = vector.shape_cast %127 : vector<1x128xi1> to vector<1x128xi1>
    %129 = vector.broadcast %128 : vector<1x128xi1> to vector<8x128xi1>
    %130 = vector.broadcast %cst_72 : f32 to vector<8x128xf32>
    %131 = arith.select %129, %126, %130 : vector<8x128xi1>, vector<8x128xf32>
    %c0_73 = arith.constant 0 : index
    %c120 = arith.constant 120 : index
    %132 = vector.load %arg15[%c0_73, %c120] : memref<8x384xf32, #tpu.memory_space<vmem>>, vector<8x128xf32>
    %cst_74 = arith.constant 0.000000e+00 : f32
    %133 = vector.shape_cast %119 : vector<1x128xi1> to vector<1x128xi1>
    %134 = vector.broadcast %133 : vector<1x128xi1> to vector<8x128xi1>
    %135 = vector.broadcast %cst_74 : f32 to vector<8x128xf32>
    %136 = arith.select %134, %132, %135 : vector<8x128xi1>, vector<8x128xf32>
    %c0_75 = arith.constant 0 : index
    %c121 = arith.constant 121 : index
    %137 = vector.load %arg15[%c0_75, %c121] : memref<8x384xf32, #tpu.memory_space<vmem>>, vector<8x128xf32>
    %138 = arith.andi %119, %125 : vector<1x128xi1>
    %cst_76 = arith.constant 0.000000e+00 : f32
    %139 = vector.shape_cast %138 : vector<1x128xi1> to vector<1x128xi1>
    %140 = vector.broadcast %139 : vector<1x128xi1> to vector<8x128xi1>
    %141 = vector.broadcast %cst_76 : f32 to vector<8x128xf32>
    %142 = arith.select %140, %137, %141 : vector<8x128xi1>, vector<8x128xf32>
    %c0_77 = arith.constant 0 : index
    %c127_78 = arith.constant 127 : index
    %143 = vector.load %arg15[%c0_77, %c127_78] : memref<8x384xf32, #tpu.memory_space<vmem>>, vector<8x128xf32>
    %cst_79 = arith.constant 0.000000e+00 : f32
    %144 = vector.shape_cast %123 : vector<1x128xi1> to vector<1x128xi1>
    %145 = vector.broadcast %144 : vector<1x128xi1> to vector<8x128xi1>
    %146 = vector.broadcast %cst_79 : f32 to vector<8x128xf32>
    %147 = arith.select %145, %143, %146 : vector<8x128xi1>, vector<8x128xf32>
    %c0_80 = arith.constant 0 : index
    %c128_81 = arith.constant 128 : index
    %148 = vector.load %arg15[%c0_80, %c128_81] : memref<8x384xf32, #tpu.memory_space<vmem>>, vector<8x128xf32>
    %c0_82 = arith.constant 0 : index
    %c129_83 = arith.constant 129 : index
    %149 = vector.load %arg15[%c0_82, %c129_83] : memref<8x384xf32, #tpu.memory_space<vmem>>, vector<8x128xf32>
    %cst_84 = arith.constant 0.000000e+00 : f32
    %150 = vector.shape_cast %125 : vector<1x128xi1> to vector<1x128xi1>
    %151 = vector.broadcast %150 : vector<1x128xi1> to vector<8x128xi1>
    %152 = vector.broadcast %cst_84 : f32 to vector<8x128xf32>
    %153 = arith.select %151, %149, %152 : vector<8x128xi1>, vector<8x128xf32>
    %c0_85 = arith.constant 0 : index
    %c135 = arith.constant 135 : index
    %154 = vector.load %arg15[%c0_85, %c135] : memref<8x384xf32, #tpu.memory_space<vmem>>, vector<8x128xf32>
    %155 = arith.andi %121, %123 : vector<1x128xi1>
    %cst_86 = arith.constant 0.000000e+00 : f32
    %156 = vector.shape_cast %155 : vector<1x128xi1> to vector<1x128xi1>
    %157 = vector.broadcast %156 : vector<1x128xi1> to vector<8x128xi1>
    %158 = vector.broadcast %cst_86 : f32 to vector<8x128xf32>
    %159 = arith.select %157, %154, %158 : vector<8x128xi1>, vector<8x128xf32>
    %c0_87 = arith.constant 0 : index
    %c136 = arith.constant 136 : index
    %160 = vector.load %arg15[%c0_87, %c136] : memref<8x384xf32, #tpu.memory_space<vmem>>, vector<8x128xf32>
    %cst_88 = arith.constant 0.000000e+00 : f32
    %161 = vector.shape_cast %121 : vector<1x128xi1> to vector<1x128xi1>
    %162 = vector.broadcast %161 : vector<1x128xi1> to vector<8x128xi1>
    %163 = vector.broadcast %cst_88 : f32 to vector<8x128xf32>
    %164 = arith.select %162, %160, %163 : vector<8x128xi1>, vector<8x128xf32>
    %c0_89 = arith.constant 0 : index
    %c137 = arith.constant 137 : index
    %165 = vector.load %arg15[%c0_89, %c137] : memref<8x384xf32, #tpu.memory_space<vmem>>, vector<8x128xf32>
    %166 = arith.andi %121, %125 : vector<1x128xi1>
    %cst_90 = arith.constant 0.000000e+00 : f32
    %167 = vector.shape_cast %166 : vector<1x128xi1> to vector<1x128xi1>
    %168 = vector.broadcast %167 : vector<1x128xi1> to vector<8x128xi1>
    %169 = vector.broadcast %cst_90 : f32 to vector<8x128xf32>
    %170 = arith.select %168, %165, %169 : vector<8x128xi1>, vector<8x128xf32>
    %171 = tpu.concatenate %131, %136, %142, %147, %148, %153, %159, %164, %170 in 0 : vector<8x128xf32>, vector<8x128xf32>, vector<8x128xf32>, vector<8x128xf32>, vector<8x128xf32>, vector<8x128xf32>, vector<8x128xf32>, vector<8x128xf32>, vector<8x128xf32> -> vector<72x128xf32>
    %c0_91 = arith.constant 0 : index
    %c0_92 = arith.constant 0 : index
    %172 = vector.load %arg5[%c0_91, %c0_92] : memref<16x72xf32, #tpu.memory_space<vmem>>, vector<16x72xf32>
    %cst_93 = arith.constant dense<0.000000e+00> : vector<16x128xf32>
    %173 = tpu.matmul %172, %171, %cst_93 {dimension_numbers = #tpu.dot_dimension_numbers<[1], [0], [0], [1], [0, 0, 1, 1], [], []>} : vector<16x72xf32>, vector<72x128xf32>, vector<16x128xf32> -> vector<16x128xf32>
    %c0_94 = arith.constant 0 : index
    %c0_95 = arith.constant 0 : index
    %174 = vector.load %arg6[%c0_94, %c0_95] : memref<16x1xf32, #tpu.memory_space<vmem>>, vector<16x1xf32>
    %175 = vector.broadcast %174 : vector<16x1xf32> to vector<16x128xf32>
    %176 = arith.addf %173, %175 : vector<16x128xf32>
    %cst_96 = arith.constant 0.000000e+00 : f32
    %177 = vector.broadcast %cst_96 : f32 to vector<16x128xf32>
    %178 = arith.maximumf %176, %177 : vector<16x128xf32>
    %c0_97 = arith.constant 0 : index
    %c0_98 = arith.constant 0 : index
    %c0_99 = arith.constant 0 : index
    %179 = vector.load %arg12[%c0_97, %c0_98, %c0_99] : memref<1x16x128xf32, #tpu.memory_space<vmem>>, vector<1x16x128xf32>
    %180 = vector.shape_cast %179 : vector<1x16x128xf32> to vector<16x128xf32>
    %181 = vector.shape_cast %178 : vector<16x128xf32> to vector<1x16x128xf32>
    tpu.vector_store %arg12[%c0_97, %c0_98, %c0_99], %181 {strides = array<i32>} : memref<1x16x128xf32, #tpu.memory_space<vmem>>, vector<1x16x128xf32>,
    %c0_100 = arith.constant 0 : index
    %c0_101 = arith.constant 0 : index
    %182 = vector.load %arg17[%c0_100, %c0_101] : memref<16x137xf32, #tpu.memory_space<vmem>>, vector<16x128xf32>
    tpu.vector_store %arg17[%c0_100, %c0_101], %178 {strides = array<i32>} : memref<16x137xf32, #tpu.memory_space<vmem>>, vector<16x128xf32>,
    %cst_102 = arith.constant 0.000000e+00 : f32
    %183 = vector.broadcast %cst_102 : f32 to vector<16x9xf32>
    %c0_103 = arith.constant 0 : index
    %c128_104 = arith.constant 128 : index
    %184 = vector.load %arg17[%c0_103, %c128_104] : memref<16x137xf32, #tpu.memory_space<vmem>>, vector<16x9xf32>
    tpu.vector_store %arg17[%c0_103, %c128_104], %183 {strides = array<i32>} : memref<16x137xf32, #tpu.memory_space<vmem>>, vector<16x9xf32>,
    %c0_105 = arith.constant 0 : index
    %c0_106 = arith.constant 0 : index
    %185 = vector.load %arg17[%c0_105, %c0_106] : memref<16x137xf32, #tpu.memory_space<vmem>>, vector<16x128xf32>
    %c0_107 = arith.constant 0 : index
    %c1_108 = arith.constant 1 : index
    %186 = vector.load %arg17[%c0_107, %c1_108] : memref<16x137xf32, #tpu.memory_space<vmem>>, vector<16x128xf32>
    %c0_109 = arith.constant 0 : index
    %c8 = arith.constant 8 : index
    %187 = vector.load %arg17[%c0_109, %c8] : memref<16x137xf32, #tpu.memory_space<vmem>>, vector<16x128xf32>
    %c0_110 = arith.constant 0 : index
    %c9 = arith.constant 9 : index
    %188 = vector.load %arg17[%c0_110, %c9] : memref<16x137xf32, #tpu.memory_space<vmem>>, vector<16x128xf32>
    %189 = arith.maximumf %185, %186 : vector<16x128xf32>
    %190 = arith.maximumf %187, %188 : vector<16x128xf32>
    %191 = arith.maximumf %189, %190 : vector<16x128xf32>
    %192 = vector.extract_strided_slice %191 {offsets = [0, 0], sizes = [16, 64], strides = [1, 1]} : vector<16x128xf32> to vector<16x64xf32>
    %c0_111 = arith.constant 0 : index
    %c0_112 = arith.constant 0 : index
    %193 = vector.load %arg7[%c0_111, %c0_112] : memref<64x16xf32, #tpu.memory_space<vmem>>, vector<64x16xf32>
    %cst_113 = arith.constant dense<0.000000e+00> : vector<16x16xf32>
    %194 = tpu.matmul %192, %193, %cst_113 {dimension_numbers = #tpu.dot_dimension_numbers<[1], [0], [0], [1], [0, 0, 1, 1], [], []>} : vector<16x64xf32>, vector<64x16xf32>, vector<16x16xf32> -> vector<16x16xf32>
    %195 = vector.extract_strided_slice %191 {offsets = [0, 64], sizes = [16, 64], strides = [1, 1]} : vector<16x128xf32> to vector<16x64xf32>
    %c0_114 = arith.constant 0 : index
    %c0_115 = arith.constant 0 : index
    %196 = vector.load %arg7[%c0_114, %c0_115] : memref<64x16xf32, #tpu.memory_space<vmem>>, vector<64x16xf32>
    %cst_116 = arith.constant dense<0.000000e+00> : vector<16x16xf32>
    %197 = tpu.matmul %195, %196, %cst_116 {dimension_numbers = #tpu.dot_dimension_numbers<[1], [0], [0], [1], [0, 0, 1, 1], [], []>} : vector<16x64xf32>, vector<64x16xf32>, vector<16x16xf32> -> vector<16x16xf32>
    %198 = tpu.concatenate %194, %197 in 1 : vector<16x16xf32>, vector<16x16xf32> -> vector<16x32xf32>
    %199 = vector.extract_strided_slice %198 {offsets = [0, 0], sizes = [1, 16], strides = [1, 1]} : vector<16x32xf32> to vector<1x16xf32>
    %200 = vector.extract_strided_slice %198 {offsets = [1, 0], sizes = [1, 16], strides = [1, 1]} : vector<16x32xf32> to vector<1x16xf32>
    %201 = vector.extract_strided_slice %198 {offsets = [2, 0], sizes = [1, 16], strides = [1, 1]} : vector<16x32xf32> to vector<1x16xf32>
    %202 = vector.extract_strided_slice %198 {offsets = [3, 0], sizes = [1, 16], strides = [1, 1]} : vector<16x32xf32> to vector<1x16xf32>
    %203 = vector.extract_strided_slice %198 {offsets = [4, 0], sizes = [1, 16], strides = [1, 1]} : vector<16x32xf32> to vector<1x16xf32>
    %204 = vector.extract_strided_slice %198 {offsets = [5, 0], sizes = [1, 16], strides = [1, 1]} : vector<16x32xf32> to vector<1x16xf32>
    %205 = vector.extract_strided_slice %198 {offsets = [6, 0], sizes = [1, 16], strides = [1, 1]} : vector<16x32xf32> to vector<1x16xf32>
    %206 = vector.extract_strided_slice %198 {offsets = [7, 0], sizes = [1, 16], strides = [1, 1]} : vector<16x32xf32> to vector<1x16xf32>
    %207 = vector.extract_strided_slice %198 {offsets = [8, 0], sizes = [1, 16], strides = [1, 1]} : vector<16x32xf32> to vector<1x16xf32>
    %208 = vector.extract_strided_slice %198 {offsets = [9, 0], sizes = [1, 16], strides = [1, 1]} : vector<16x32xf32> to vector<1x16xf32>
    %209 = vector.extract_strided_slice %198 {offsets = [10, 0], sizes = [1, 16], strides = [1, 1]} : vector<16x32xf32> to vector<1x16xf32>
    %210 = vector.extract_strided_slice %198 {offsets = [11, 0], sizes = [1, 16], strides = [1, 1]} : vector<16x32xf32> to vector<1x16xf32>
    %211 = vector.extract_strided_slice %198 {offsets = [12, 0], sizes = [1, 16], strides = [1, 1]} : vector<16x32xf32> to vector<1x16xf32>
    %212 = vector.extract_strided_slice %198 {offsets = [13, 0], sizes = [1, 16], strides = [1, 1]} : vector<16x32xf32> to vector<1x16xf32>
    %213 = vector.extract_strided_slice %198 {offsets = [14, 0], sizes = [1, 16], strides = [1, 1]} : vector<16x32xf32> to vector<1x16xf32>
    %214 = vector.extract_strided_slice %198 {offsets = [15, 0], sizes = [1, 16], strides = [1, 1]} : vector<16x32xf32> to vector<1x16xf32>
    %215 = tpu.concatenate %199, %200, %201, %202, %203, %204, %205, %206, %207, %208, %209, %210, %211, %212, %213, %214 in 1 : vector<1x16xf32>, vector<1x16xf32>, vector<1x16xf32>, vector<1x16xf32>, vector<1x16xf32>, vector<1x16xf32>, vector<1x16xf32>, vector<1x16xf32>, vector<1x16xf32>, vector<1x16xf32>, vector<1x16xf32>, vector<1x16xf32>, vector<1x16xf32>, vector<1x16xf32>, vector<1x16xf32>, vector<1x16xf32> -> vector<1x256xf32>
    %216 = vector.extract_strided_slice %198 {offsets = [0, 16], sizes = [1, 16], strides = [1, 1]} : vector<16x32xf32> to vector<1x16xf32>
    %217 = vector.extract_strided_slice %198 {offsets = [1, 16], sizes = [1, 16], strides = [1, 1]} : vector<16x32xf32> to vector<1x16xf32>
    %218 = vector.extract_strided_slice %198 {offsets = [2, 16], sizes = [1, 16], strides = [1, 1]} : vector<16x32xf32> to vector<1x16xf32>
    %219 = vector.extract_strided_slice %198 {offsets = [3, 16], sizes = [1, 16], strides = [1, 1]} : vector<16x32xf32> to vector<1x16xf32>
    %220 = vector.extract_strided_slice %198 {offsets = [4, 16], sizes = [1, 16], strides = [1, 1]} : vector<16x32xf32> to vector<1x16xf32>
    %221 = vector.extract_strided_slice %198 {offsets = [5, 16], sizes = [1, 16], strides = [1, 1]} : vector<16x32xf32> to vector<1x16xf32>
    %222 = vector.extract_strided_slice %198 {offsets = [6, 16], sizes = [1, 16], strides = [1, 1]} : vector<16x32xf32> to vector<1x16xf32>
    %223 = vector.extract_strided_slice %198 {offsets = [7, 16], sizes = [1, 16], strides = [1, 1]} : vector<16x32xf32> to vector<1x16xf32>
    %224 = vector.extract_strided_slice %198 {offsets = [8, 16], sizes = [1, 16], strides = [1, 1]} : vector<16x32xf32> to vector<1x16xf32>
    %225 = vector.extract_strided_slice %198 {offsets = [9, 16], sizes = [1, 16], strides = [1, 1]} : vector<16x32xf32> to vector<1x16xf32>
    %226 = vector.extract_strided_slice %198 {offsets = [10, 16], sizes = [1, 16], strides = [1, 1]} : vector<16x32xf32> to vector<1x16xf32>
    %227 = vector.extract_strided_slice %198 {offsets = [11, 16], sizes = [1, 16], strides = [1, 1]} : vector<16x32xf32> to vector<1x16xf32>
    %228 = vector.extract_strided_slice %198 {offsets = [12, 16], sizes = [1, 16], strides = [1, 1]} : vector<16x32xf32> to vector<1x16xf32>
    %229 = vector.extract_strided_slice %198 {offsets = [13, 16], sizes = [1, 16], strides = [1, 1]} : vector<16x32xf32> to vector<1x16xf32>
    %230 = vector.extract_strided_slice %198 {offsets = [14, 16], sizes = [1, 16], strides = [1, 1]} : vector<16x32xf32> to vector<1x16xf32>
    %231 = vector.extract_strided_slice %198 {offsets = [15, 16], sizes = [1, 16], strides = [1, 1]} : vector<16x32xf32> to vector<1x16xf32>
    %232 = tpu.concatenate %216, %217, %218, %219, %220, %221, %222, %223, %224, %225, %226, %227, %228, %229, %230, %231 in 1 : vector<1x16xf32>, vector<1x16xf32>, vector<1x16xf32>, vector<1x16xf32>, vector<1x16xf32>, vector<1x16xf32>, vector<1x16xf32>, vector<1x16xf32>, vector<1x16xf32>, vector<1x16xf32>, vector<1x16xf32>, vector<1x16xf32>, vector<1x16xf32>, vector<1x16xf32>, vector<1x16xf32>, vector<1x16xf32> -> vector<1x256xf32>
    %233 = tpu.concatenate %215, %232 in 0 : vector<1x256xf32>, vector<1x256xf32> -> vector<2x256xf32>
    %c0_117 = arith.constant 0 : index
    %c0_118 = arith.constant 0 : index
    %234 = vector.load %arg8[%c0_117, %c0_118] : memref<256x10xf32, #tpu.memory_space<vmem>>, vector<256x10xf32>
    %cst_119 = arith.constant dense<0.000000e+00> : vector<2x10xf32>
    %235 = tpu.matmul %233, %234, %cst_119 {dimension_numbers = #tpu.dot_dimension_numbers<[1], [0], [0], [1], [0, 0, 1, 1], [], []>} : vector<2x256xf32>, vector<256x10xf32>, vector<2x10xf32> -> vector<2x10xf32>
    %c0_120 = arith.constant 0 : index
    %c0_121 = arith.constant 0 : index
    %236 = vector.load %arg9[%c0_120, %c0_121] : memref<1x10xf32, #tpu.memory_space<vmem>>, vector<1x10xf32>
    %237 = vector.broadcast %236 : vector<1x10xf32> to vector<2x10xf32>
    %238 = arith.addf %235, %237 : vector<2x10xf32>
    %c0_122 = arith.constant 0 : index
    %c0_123 = arith.constant 0 : index
    %c0_124 = arith.constant 0 : index
    %239 = vector.load %arg13[%c0_122, %c0_123, %c0_124] : memref<1x2x10xf32, #tpu.memory_space<vmem>>, vector<1x2x10xf32>
    %240 = vector.shape_cast %239 : vector<1x2x10xf32> to vector<2x10xf32>
    %241 = vector.shape_cast %238 : vector<2x10xf32> to vector<1x2x10xf32>
    tpu.vector_store %arg13[%c0_122, %c0_123, %c0_124], %241 {strides = array<i32>} : memref<1x2x10xf32, #tpu.memory_space<vmem>>, vector<1x2x10xf32>,
    return
  }
  func.func @transform_0(%arg0: i32) -> (i32, i32, i32) {
    %c0_i32 = arith.constant 0 : i32
    %c0_i32_0 = arith.constant 0 : i32
    %c0_i32_1 = arith.constant 0 : i32
    return %arg0, %c0_i32, %c0_i32_0 : i32, i32, i32
  }
  func.func @transform_1(%arg0: i32) -> (i32, i32) {
    %c0_i32 = arith.constant 0 : i32
    %c0_i32_0 = arith.constant 0 : i32
    %c0_i32_1 = arith.constant 0 : i32
    return %c0_i32, %c0_i32_0 : i32, i32
  }
  func.func @transform_2(%arg0: i32) -> (i32, i32) {
    %c0_i32 = arith.constant 0 : i32
    %c0_i32_0 = arith.constant 0 : i32
    %c0_i32_1 = arith.constant 0 : i32
    return %c0_i32, %c0_i32_0 : i32, i32
  }
  func.func @transform_3(%arg0: i32) -> (i32, i32) {
    %c0_i32 = arith.constant 0 : i32
    %c0_i32_0 = arith.constant 0 : i32
    %c0_i32_1 = arith.constant 0 : i32
    return %c0_i32, %c0_i32_0 : i32, i32
  }
  func.func @transform_4(%arg0: i32) -> (i32, i32) {
    %c0_i32 = arith.constant 0 : i32
    %c0_i32_0 = arith.constant 0 : i32
    %c0_i32_1 = arith.constant 0 : i32
    return %c0_i32, %c0_i32_0 : i32, i32
  }
  func.func @transform_5(%arg0: i32) -> (i32, i32) {
    %c0_i32 = arith.constant 0 : i32
    %c0_i32_0 = arith.constant 0 : i32
    %c0_i32_1 = arith.constant 0 : i32
    return %c0_i32, %c0_i32_0 : i32, i32
  }
  func.func @transform_6(%arg0: i32) -> (i32, i32) {
    %c0_i32 = arith.constant 0 : i32
    %c0_i32_0 = arith.constant 0 : i32
    %c0_i32_1 = arith.constant 0 : i32
    return %c0_i32, %c0_i32_0 : i32, i32
  }
  func.func @transform_7(%arg0: i32) -> (i32, i32) {
    %c0_i32 = arith.constant 0 : i32
    %c0_i32_0 = arith.constant 0 : i32
    %c0_i32_1 = arith.constant 0 : i32
    return %c0_i32, %c0_i32_0 : i32, i32
  }
  func.func @transform_8(%arg0: i32) -> (i32, i32) {
    %c0_i32 = arith.constant 0 : i32
    %c0_i32_0 = arith.constant 0 : i32
    %c0_i32_1 = arith.constant 0 : i32
    return %c0_i32, %c0_i32_0 : i32, i32
  }
  func.func @transform_9(%arg0: i32) -> (i32, i32, i32) {
    %c0_i32 = arith.constant 0 : i32
    %c0_i32_0 = arith.constant 0 : i32
    %c0_i32_1 = arith.constant 0 : i32
    return %arg0, %c0_i32, %c0_i32_0 : i32, i32, i32
  }
  func.func @transform_10(%arg0: i32) -> (i32, i32, i32) {
    %c0_i32 = arith.constant 0 : i32
    %c0_i32_0 = arith.constant 0 : i32
    %c0_i32_1 = arith.constant 0 : i32
    return %arg0, %c0_i32, %c0_i32_0 : i32, i32, i32
  }
  func.func @transform_11(%arg0: i32) -> (i32, i32, i32) {
    %c0_i32 = arith.constant 0 : i32
    %c0_i32_0 = arith.constant 0 : i32
    %c0_i32_1 = arith.constant 0 : i32
    return %arg0, %c0_i32, %c0_i32_0 : i32, i32, i32
  }
  func.func @transform_12(%arg0: i32) -> (i32, i32, i32) {
    %c0_i32 = arith.constant 0 : i32
    %c0_i32_0 = arith.constant 0 : i32
    %c0_i32_1 = arith.constant 0 : i32
    return %arg0, %c0_i32, %c0_i32_0 : i32, i32, i32
  }
}

</mosaic_0001>

<bundles_post_ra>
// kernel: tpu_custom_call.1
= control target key start
LH: loop header
LB: loop body
LE: loop exit
PB: predicated region body
PF: predicated region fallthrough
CT: control target
= control target key end

     0   :  { %s3783_s0 = inlined_call_operand.vmem [shape: f32[4,4,256], index: 0, kind: input, shape index: {}]   ;;  %s3784_s1 = inlined_call_operand.vmem [shape: f32[8,36], index: 1, kind: input, shape index: {}]   ;;  %s3785_s2 = inlined_call_operand.vmem [shape: f32[8,1], index: 2, kind: input, shape index: {}]   ;;  %s3786_s3 = inlined_call_operand.vmem [shape: f32[256,64], index: 3, kind: input, shape index: {}]   ;;  %s3787_s4 = inlined_call_operand.vmem [shape: f32[16,72], index: 4, kind: input, shape index: {}]   ;;  %s3788_s5 = inlined_call_operand.vmem [shape: f32[16,1], index: 5, kind: input, shape index: {}]   ;;  %s3789_s6 = inlined_call_operand.vmem [shape: f32[64,16], index: 6, kind: input, shape index: {}]   ;;  %s3790_s7 = inlined_call_operand.vmem [shape: f32[256,10], index: 7, kind: input, shape index: {}]   ;;  %s3791_s8 = inlined_call_operand.vmem [shape: f32[1,10], index: 8, kind: input, shape index: {}]   ;;  %s3792_s9 = inlined_call_operand.hbm [shape: f32[4,8,256], index: 9, kind: output, shape index: {0}]   ;;  %s3793_s10 = inlined_call_operand.hbm [shape: f32[2,8,128], index: 10, kind: output, shape index: {1}]   ;;  %s3794_s11 = inlined_call_operand.hbm [shape: f32[2,16,128], index: 11, kind: output, shape index: {2}]   ;;  %s3795_s12 = inlined_call_operand.hbm [shape: f32[2,2,10], index: 12, kind: output, shape index: {3}]  }
   0x1   :  { %3812 = sst [smem:[#allocation17_spill]] %s3783_s0 }
   0x2   :  { %3813 = sst [smem:[#allocation18_spill]] %s3784_s1 }
   0x3   :  { %3814 = sst [smem:[#allocation19_spill]] %s3785_s2 }
   0x4   :  { %3815 = sst [smem:[#allocation20_spill]] %s3786_s3 }
   0x5   :  { %3816 = sst [smem:[#allocation21_spill]] %s3787_s4 }
   0x6   :  { %3817 = sst [smem:[#allocation22_spill]] %s3788_s5 }
   0x7   :  { %3818 = sst [smem:[#allocation23_spill]] %s3789_s6 }
   0x8   :  { %18 = vsyncpa [#allocation7], 0 }
   0x9   :  { %20 = vsyncpa [#allocation7 + $0x1], 0 }
   0xa   :  { %21 = vsyncpa [#allocation9], 0 }
   0xb   :  { %23 = vsyncpa [#allocation9 + $0x1], 0 }
   0xc   :  { %24 = vsyncpa [#allocation12], 0 }
   0xd   :  { %26 = vsyncpa [#allocation12 + $0x1], 0  ;;  %s2834_s21 = smov 0   ;;  %s2836_s22 = smov 0  }
   0xe   :  { %s2838_s23 = smov 0   ;;  %s2840_s24 = smov 0  }
   0xf LB: > { %s2855_s25 = sadd.s32 4294967295, %s2740_s24   ;;  %s3796_s26 = sadd.s32 4294967294, %s2740_s24   ;;  %s2740_s24 = sphi %s2840_s24, %s3852_s24   ;;  %s2736_s23 = sphi %s2838_s23, %s3851_s23   ;;  %s2732_s22 = sphi %s2836_s22, %s3850_s22   ;;  %s2728_s21 = sphi %s2834_s21, %s3849_s21  }
  0x10   : > { %s2859_s27 = sadd.s32 1, %s2740_s24   ;;  %s233_s28 = sadd.s32 1, %s2736_s23 }
  0x11   : > { %s230_s29 = ssub.s32 %s2740_s24, %s2859_s27  ;;  %p243_p0 = scmp.ne.s32.totalorder %s2736_s23, %s2732_s22 }
  0x12   : > { %p231_p1 = scmp.eq.s32.totalorder %s230_s29, 0  ;;  %p244_p2 = scmp.eq.s32.totalorder %s2855_s25, 1 }
  0x13   : > { %p249_p3 = scmp.ne.s32.totalorder %s2732_s22, %s2728_s21  ;;  %p250_p4 = scmp.eq.s32.totalorder %s3796_s26, 1 }
  0x14   : > { %s2872_s30 = scalar_select %p231_p1, %s2736_s23, %s233_s28  }
  0x15   : > { %p2874_p5 = por %p244_p2, %p243_p0  ;;  %p2878_p6 = por %p250_p4, %p249_p3 }
  0x16   : > { %3819 = sst [smem:[#allocation16_spill]] %s2872_s30  ;;  %p2172_p7 = scmp.ge.s32.totalorder %s2740_s24, 1 }
  0x17   : > { %p380_p8 = scmp.lt.s32.totalorder %s2740_s24, 3 }
  0x19   : > { %p381_p9 = pnand %p2172_p7, %p380_p8 }
  0x1a   : > { %s2177_s15 = sshll.u32 (!%p381_p9), %s2855_s25, 1  ;;  %s3822_s0 = sld [smem:[#allocation17_spill]] (!%p381_p9) }
  0x1b   : > { %384 = sbr.rel (%p381_p9) target bundleno = 2360 (0x938), region = 56  ;;  %p439_p10 = scmp.lt.s32.totalorder (!%p381_p9), %s2177_s15, 3 }
  0x1c   : > { %s3803_s20 = smov (!%p381_p9), 112   ;;  %s2744_s28 = smov (!%p381_p9), 111  }
  0x1d   : > { %s3805_s29 = smov (!%p381_p9), 127   ;;  %s3799_s17 = smov (!%p381_p9), 16  }
  0x1e   : > { %s2749_s18 = smov (!%p381_p9), 15   ;;  %s3823_s2 = sld [smem:[#allocation19_spill]] (!%p381_p9) }
  0x1f   : > { %s3828_s1 = sld [smem:[#allocation18_spill]] (!%p381_p9)  ;;  %s2756_s26 = smov (!%p381_p9), 7  }
  0x20   : > { %v2742_v0 = vmov 0.0   ;;  %s3854_s15 = smov (!%p439_p10, %s2177_s15), 3  ;;  %vm3798_vm0 = vcmask 138240   ;;  %v2751_v11 = vmov 0   ;;  %v453_v13 = vlaneseq  ;;  %s3836_s3 = sld [smem:[#allocation20_spill]] }
  0x21   : > { %446 = vst [vmem:[#allocation2] sm:$0xf] %v2742_v0  ;;  %447 = vst [vmem:[#allocation2 + $0x14] sm:$0xf] %v2742_v0  ;;  %926 = vmatprep.mubr.f32.mxu1 %v2742_v0  ;;  %s2217_s16 = sshll.u32 %s3854_s15, 3  ;;  %s2746_s15 = smov 113   ;;  %2493 = vset.pattern.permute.xlu0 %v2751_v11 }
  0x22   : > { %s443_s19 = scalar_lea.vmem %s3822_s0, %s2217_s16  ;;  %s3801_s16 = smov 1   ;;  %1017 = vst.msk [vmem:[#allocation4 + $0x20] sm:$0xff] %vm3798_vm0, %v2742_v0  ;;  %2514 = vset.pattern.permute.xlu1 %v2751_v11  ;;  %v2956_v14 = vand.u32 127, %v453_v13  ;;  %vm755_vm5 = vcmask 908288   ;;  %vm822_vm8 = vcmask 1043456   ;;  %vm654_vm9 = vcmask 1039360  }
  0x23   : > { %v2891_v1 = vld [vmem:[%s443_s19 + $0x8] sm:$0xff]  ;;  %v2893_v2 = vld [vmem:[%s443_s19] sm:$0xff]  ;;  %s2750_s19 = smov 17   ;;  %vm689_vm11 = vcmask 924672   ;;  %vm720_vm12 = vcmask 916480   ;;  %s3809_s0 = smov 120  }
  0x24   : > { %452 = vst [vmem:[#allocation2 + $0xc] sm:$0xff] %v2891_v1  ;;  %714 = vrot.lane.b32.xlu0 %v2891_v1, %s3803_s20  ;;  %449 = vst [vmem:[#allocation2 + $0x4] sm:$0xff] %v2893_v2  ;;  %710 = vrot.lane.b32.xlu1 %v2893_v2, %s3803_s20  ;;  %v2907_v3 = vcombine.high %v2893_v2, %v2893_v2  ;;  %v2935_v7 = vcombine.high %v2891_v1, %v2891_v1  ;;  %v840_v12 = vld [vmem:[%s3823_s2] sm:$0xff]  ;;  %v455_v15 = vadd.s32 128, %v2956_v14  ;;  %s3840_s4 = sld [smem:[#allocation21_spill]]  ;;  %s2219_s30 = sshll.u32 %s2855_s25, 9 }
  0x25   : > { %v458_v16 = vand.u32 255, %v2956_v14  ;;  %s3841_s5 = sld [smem:[#allocation22_spill]] }
  0x26   : > { %v459_v17 = vand.u32 255, %v455_v15  ;;  %v457_v15 = vadd.s32 384, %v2956_v14  ;;  %s3843_s6 = sld [smem:[#allocation23_spill]] }
  0x27   : > { %v2960_v18 = vshra.s32 %v458_v16, 4  ;;  %v2962_v19 = vand.u32 15, %v458_v16 }
  0x28   : > { %749 = vrot.lane.b32.xlu0 %v2891_v1, %s2744_s28  ;;  %745 = vrot.lane.b32.xlu1 %v2893_v2, %s2744_s28  ;;  %v630_v8 = vld [vmem:[#allocation2 + $0x14] sm:$0xf]  ;;  %v2966_v22 = vshra.s32 %v459_v17, 4  ;;  %v2968_v23 = vand.u32 15, %v459_v17 }
  0x29   : > { %vm474_vm1 = vcmp.le.s32.totalorder %v2960_v18, 14  ;;  %vm482_vm2 = vcmp.le.s32.totalorder %v2962_v19, 14  ;;  %vm478_vm13 = vcmp.ge.s32.totalorder %v2962_v19, 1 }
  0x2a   : > { %vm475_vm3 = vcmp.le.s32.totalorder %v2966_v22, 14  ;;  %vm483_vm4 = vcmp.le.s32.totalorder %v2968_v23, 14  ;;  %vm733_vm6 = vmand %vm474_vm1, %vm482_vm2  ;;  %vm479_vm10 = vcmp.ge.s32.totalorder %v2968_v23, 1 }
  0x2b   : > { %v486_v4 = vld [vmem:[#allocation2] sm:$0xff]  ;;  %v487_v6 = vld [vmem:[#allocation2 + $0x8] sm:$0xff]  ;;  %v488_v10 = vld [vmem:[#allocation2 + $0x10] sm:$0xf] }
  0x2c   : > { %648 = vrot.lane.b32.xlu0 %v2891_v1, %s3805_s29  ;;  %747 = vrot.lane.b32.xlu1 %v2907_v3, %s2744_s28  ;;  %v504_v5 = vcombine.high %v486_v4, %v486_v4  ;;  %v505_v9 = vcombine.high %v487_v6, %v487_v6  ;;  %vm734_vm7 = vmand %vm475_vm3, %vm483_vm4 }
  0x2d   : > { %vm3003_vm14 = vmand %vm475_vm3, %vm479_vm10 }
  0x2e   : > { %vm667_vm15 = vmand %vm474_vm1, %vm478_vm13 }
  0x30   : > { %683 = vrot.lane.b32.xlu0 %v2891_v1, %s2746_s15  ;;  %646 = vrot.lane.b32.xlu1 %v2907_v3, %s3805_s29 }
  0x34   : > { %681 = vrot.lane.b32.xlu1 %v2907_v3, %s2746_s15  ;;  %712 = vrot.lane.b32.xlu0 %v2907_v3, %s3803_s20 }
  0x38   : > { %679 = vrot.lane.b32.xlu1 %v2893_v2, %s2746_s15  ;;  %644 = vrot.lane.b32.xlu0 %v2893_v2, %s3805_s29 }
  0x3c   : > { %607 = vrot.lane.b32.xlu1 %v487_v6, %s3801_s16  ;;  %605 = vrot.lane.b32.xlu0 %v504_v5, %s3801_s16 }
  0x40   : > { %539 = vrot.lane.b32.xlu1 %v504_v5, %s3799_s17  ;;  %603 = vrot.lane.b32.xlu0 %v486_v4, %s3801_s16 }
  0x44   : > { %574 = vrot.lane.b32.xlu1 %v504_v5, %s2749_s18  ;;  %541 = vrot.lane.b32.xlu0 %v487_v6, %s3799_s17 }
  0x48   : > { %537 = vrot.lane.b32.xlu1 %v486_v4, %s3799_s17  ;;  %576 = vrot.lane.b32.xlu0 %v487_v6, %s2749_s18 }
  0x4c   : > { %508 = vrot.lane.b32.xlu1 %v504_v5, %s2750_s19  ;;  %572 = vrot.lane.b32.xlu0 %v486_v4, %s2749_s18 }
  0x50   : > { %506 = vrot.lane.b32.xlu1 %v486_v4, %s2750_s19  ;;  %510 = vrot.lane.b32.xlu0 %v487_v6, %s2750_s19 }
  0x54   : > { %718 = vrot.lane.b32.xlu1 %v630_v8, %s3803_s20  ;;  %716 = vrot.lane.b32.xlu0 %v2935_v7, %s3803_s20  ;;  %s3807_s20 = smov 64  }
  0x58   : > { %753 = vrot.lane.b32.xlu1 %v630_v8, %s2744_s28  ;;  %751 = vrot.lane.b32.xlu0 %v2935_v7, %s2744_s28 }
  0x5c   : > { %652 = vrot.lane.b32.xlu1 %v630_v8, %s3805_s29  ;;  %650 = vrot.lane.b32.xlu0 %v2935_v7, %s3805_s29 }
  0x60   : > { %687 = vrot.lane.b32.xlu1 %v630_v8, %s2746_s15  ;;  %685 = vrot.lane.b32.xlu0 %v2935_v7, %s2746_s15  ;;  %s3839_s15 = smov 1  }
  0x64   : > { %611 = vrot.lane.b32.xlu1 %v488_v10, %s3801_s16  ;;  %609 = vrot.lane.b32.xlu0 %v505_v9, %s3801_s16  ;;  %s2753_s16 = smov 119  }
  0x68   : > { %545 = vrot.lane.b32.xlu1 %v488_v10, %s3799_s17  ;;  %543 = vrot.lane.b32.xlu0 %v505_v9, %s3799_s17  ;;  %s3838_s17 = smov 112  }
  0x6c   : > { %580 = vrot.lane.b32.xlu1 %v488_v10, %s2749_s18  ;;  %578 = vrot.lane.b32.xlu0 %v505_v9, %s2749_s18  ;;  %s3213_s18 = sand.u32 1, %s2732_s22  }
  0x6d   : > { %s2174_s2 = sshll.u32 %s3213_s18, 3 }
  0x70   : > { %514 = vrot.lane.b32.xlu1 %v488_v10, %s2750_s19  ;;  %512 = vrot.lane.b32.xlu0 %v505_v9, %s2750_s19  ;;  %v456_v9 = vadd.s32 256, %v2956_v14  ;;  %s2173_s19 = sshll.u32 %s3213_s18, 5 }
  0x71   : > { %s3220_s28 = scalar_lea.vmem [#allocation6], %s2173_s19  ;;  %s3384_s19 = scalar_lea.vmem [#allocation8], %s2174_s2 }
  0x74   : > { %843 = vperm.xlu0 %2493, %v840_v12  }
  0x96   : > { %v2964_v20 = vpop.permute.xlu0 %714  ;;  %v711_v21 = vpop.permute.xlu1 %710 }
  0x9a   : > { %v2972_v24 = vpop.permute.xlu0 %749  ;;  %v746_v25 = vpop.permute.xlu1 %745 }
  0x9e   : > { %v2984_v26 = vpop.permute.xlu0 %648  ;;  %v748_v27 = vpop.permute.xlu1 %747 }
  0x9f   : > { %v756_v28 = vsel %vm755_vm5, %v746_v25, %v748_v27  ;;  %v757_v29 = vsel %vm755_vm5, %v748_v27, %v2972_v24 }
  0xa0   : > { %v765_v30 = vsel %vm734_vm7, %v757_v29, 0.0  ;;  %v764_v31 = vsel %vm733_vm6, %v756_v28, 0.0  ;;  %vm582_vm6 = vcmask 121856   ;;  %v460_v28 = vand.u32 255, %v456_v9 }
  0xa1   : > { %2181 = vmatprep.subr.msk.mxu1 %vm822_vm8, %v765_v30 }
  0xa2   : > { %v2990_v32 = vpop.permute.xlu0 %683  ;;  %2182 = vmatpush1.msk.msra.mxu1 %vm822_vm8, %v764_v31  ;;  %v647_v33 = vpop.permute.xlu1 %646  ;;  %v3081_v38 = vand.u32 15, %v460_v28  ;;  %v3085_v19 = vshra.s32 %v460_v28, 4 }
  0xa3   : > { %v656_v34 = vsel %vm654_vm9, %v647_v33, %v2984_v26 }
  0xa4   : > { %v664_v37 = vsel %vm483_vm4, %v656_v34, 0.0 }
  0xa5   : > { %v803_v45 = vrot.slane %v664_v37, 4 }
  0xa6   : > { %v682_v35 = vpop.permute.xlu1 %681  ;;  %v713_v36 = vpop.permute.xlu0 %712 }
  0xa7   : > { %v691_v39 = vsel %vm689_vm11, %v682_v35, %v2990_v32  ;;  %v721_v40 = vsel %vm720_vm12, %v711_v21, %v713_v36  ;;  %v722_v41 = vsel %vm720_vm12, %v713_v36, %v2964_v20  ;;  %v832_v59 = vsel %vm822_vm8, %v2907_v3, %v803_v45 }
  0xa8   : > { %v729_v42 = vsel %vm474_vm1, %v721_v40, 0.0  ;;  %v730_v43 = vsel %vm475_vm3, %v722_v41, 0.0  ;;  %v699_v46 = vsel %vm3003_vm14, %v691_v39, 0.0  ;;  %vm613_vm1 = vcmask 7168  }
  0xa9   : > { %v815_v44 = vrot.slane %v730_v43, 4  ;;  %v814_v49 = vrot.slane %v729_v42, 4  ;;  %vm471_vm3 = vcmp.ge.s32.totalorder %v2966_v22, 1  ;;  %vm547_vm14 = vcmask 130048  }
  0xaa   : > { %v680_v47 = vpop.permute.xlu1 %679  ;;  %v645_v48 = vpop.permute.xlu0 %644  ;;  %vm561_vm7 = vmand %vm471_vm3, %vm483_vm4  ;;  %v461_v36 = vand.u32 255, %v457_v15 }
  0xab   : > { %v690_v50 = vsel %vm689_vm11, %v680_v47, %v682_v35  ;;  %v655_v51 = vsel %vm654_vm9, %v645_v48, %v647_v33  ;;  %v836_v52 = vsel %vm822_vm8, %v699_v46, %v815_v44  ;;  %v3101_v48 = vld [vmem:[%s3828_s1] sm:$0xff]  ;;  %s3837_s1 = smov 127  }
  0xac   : > { %v698_v53 = vsel %vm667_vm15, %v690_v50, 0.0  ;;  %v663_v54 = vsel %vm482_vm2, %v655_v51, 0.0  ;;  %886 = vmatprep.subr.mxu1 %v836_v52  ;;  %vm470_vm15 = vcmp.ge.s32.totalorder %v2960_v18, 1  ;;  %v3087_v18 = vand.u32 15, %v461_v36 }
  0xad   : > { %v802_v55 = vrot.slane %v663_v54, 4  ;;  %v835_v56 = vsel %vm822_vm8, %v698_v53, %v814_v49  ;;  %vm560_vm4 = vmand %vm470_vm15, %vm482_vm2  ;;  %v3094_v45 = vshra.s32 %v461_v36, 4 }
  0xae   : > { %887 = vmatpush1.msra.mxu1 %v835_v56  ;;  %v3028_v57 = vpop.permute.xlu1 %607  ;;  %v606_v58 = vpop.permute.xlu0 %605  ;;  %vm490_vm2 = vmand %vm471_vm3, %vm479_vm10 }
  0xaf   : > { %888 = vmatprep.subr.mxu1 %v832_v59  ;;  %v831_v60 = vsel %vm822_vm8, %v2893_v2, %v802_v55  ;;  %v615_v63 = vsel %vm613_vm1, %v606_v58, %v3028_v57 }
  0xb0   : > { %889 = vmatpush1.msra.mxu1 %v831_v60  ;;  %v623_v6 = vsel %vm479_vm10, %v615_v63, 0.0  ;;  %vm3797_vm10 = vcmask 293888  }
  0xb1   : > { %v785_v10 = vrot.slane %v623_v6, 4 }
  0xb2   : > { %v540_v61 = vpop.permute.xlu1 %539  ;;  %v604_v62 = vpop.permute.xlu0 %603 }
  0xb3   : > { %v614_v3 = vsel %vm613_vm1, %v604_v62, %v606_v58 }
  0xb4   : > { %v622_v12 = vsel %vm478_vm13, %v614_v3, 0.0 }
  0xb5   : > { %v784_v29 = vrot.slane %v622_v12, 4 }
  0xb6   : > { %v575_v4 = vpop.permute.xlu1 %574  ;;  %v3036_v5 = vpop.permute.xlu0 %541 }
  0xb7   : > { %v549_v16 = vsel %vm547_vm14, %v540_v61, %v3036_v5 }
  0xb8   : > { %v557_v31 = vsel %vm471_vm3, %v549_v16, 0.0  ;;  %vm485_vm3 = vcmp.le.s32.totalorder %v3087_v18, 14 }
  0xb9   : > { %v773_v41 = vrot.slane %v557_v31, 4 }
  0xba   : > { %v538_v2 = vpop.permute.xlu1 %537  ;;  %v3046_v8 = vpop.permute.xlu0 %576 }
  0xbb   : > { %v584_v11 = vsel %vm582_vm6, %v575_v4, %v3046_v8  ;;  %v548_v17 = vsel %vm547_vm14, %v538_v2, %v540_v61 }
  0xbc   : > { %v592_v13 = vsel %vm561_vm7, %v584_v11, 0.0  ;;  %v556_v33 = vsel %vm470_vm15, %v548_v17, 0.0  ;;  %vm3072_vm7 = vmand %vm470_vm15, %vm478_vm13  ;;  %vm484_vm13 = vcmp.le.s32.totalorder %v3081_v38, 14  ;;  %vm476_vm15 = vcmp.le.s32.totalorder %v3085_v19, 14 }
  0xbd   : > { %v828_v21 = vsel %vm822_vm8, %v592_v13, %v785_v10  ;;  %v772_v42 = vrot.slane %v556_v33, 4 }
  0xbe   : > { %v509_v25 = vpop.permute.xlu1 %508  ;;  %890 = vmatprep.subr.mxu1 %v828_v21  ;;  %v573_v27 = vpop.permute.xlu0 %572 }
  0xbf   : > { %v583_v30 = vsel %vm582_vm6, %v573_v27, %v575_v4 }
  0xc0   : > { %v591_v34 = vsel %vm560_vm4, %v583_v30, 0.0  ;;  %vm477_vm4 = vcmp.le.s32.totalorder %v3094_v45, 14 }
  0xc1   : > { %v827_v37 = vsel %vm822_vm8, %v591_v34, %v784_v29 }
  0xc2   : > { %v507_v39 = vpop.permute.xlu1 %506  ;;  %891 = vmatpush1.msra.mxu1 %v827_v37  ;;  %v3083_v40 = vpop.permute.xlu0 %510 }
  0xc3   : > { %v517_v43 = vsel %vm3798_vm0, %v507_v39, %v509_v25  ;;  %v518_v23 = vsel %vm3798_vm0, %v509_v25, %v3083_v40  ;;  %vm481_vm0 = vcmp.ge.s32.totalorder %v3087_v18, 1 }
  0xc4   : > { %v525_v22 = vsel %vm3072_vm7, %v517_v43, 0.0  ;;  %v526_v44 = vsel %vm490_vm2, %v518_v23, 0.0  ;;  %vm735_vm7 = vmand %vm476_vm15, %vm484_vm13 }
  0xc5   : > { %v824_v46 = vsel %vm822_vm8, %v526_v44, %v773_v41  ;;  %v823_v47 = vsel %vm822_vm8, %v525_v22, %v772_v42  ;;  %vm736_vm2 = vmand %vm477_vm4, %vm485_vm3 }
  0xc6   : > { %v719_v49 = vpop.permute.xlu1 %718  ;;  %892 = vmatprep.subr.mxu1 %v824_v46  ;;  %v717_v50 = vpop.permute.xlu0 %716 }
  0xc7   : > { %893 = vmatpush1.msra.mxu1 %v823_v47  ;;  %v723_v55 = vsel %vm720_vm12, %v2964_v20, %v717_v50  ;;  %v724_v59 = vsel %vm720_vm12, %v717_v50, %v719_v49 }
  0xc8   : > { %2183 = vmatmul.mubr.msk.f32.vlgmr.msra.gmra.mxu1 %vm3797_vm10, %v3101_v48  ;;  %vm480_vm10 = vcmp.ge.s32.totalorder %v3081_v38, 1  ;;  %v732_v63 = vsel %vm477_vm4, %v724_v59, 0.0 }
  0xc9   : > { %997 = vmatprep.mubr.f32.mxu1 %v2742_v0  ;;  %v817_v9 = vrot.slane %v732_v63, 4 }
  0xca   : > { %v754_v51 = vpop.permute.xlu1 %753  ;;  %v752_v52 = vpop.permute.xlu0 %751 }
  0xcb   : > { %v758_v53 = vsel %vm755_vm5, %v2972_v24, %v752_v52  ;;  %v759_v54 = vsel %vm755_vm5, %v752_v52, %v754_v51  ;;  %v731_v24 = vsel %vm476_vm15, %v723_v55, 0.0  ;;  %vm669_vm5 = vmand %vm476_vm15, %vm480_vm10  ;;  %vm473_vm15 = vcmp.ge.s32.totalorder %v3094_v45, 1 }
  0xcc   : > { %v766_v56 = vsel %vm735_vm7, %v758_v53, 0.0  ;;  %v767_v58 = vsel %vm736_vm2, %v759_v54, 0.0  ;;  %vm670_vm7 = vmand %vm477_vm4, %vm481_vm0 }
  0xcd   : > { %2184 = vmatprep.subr.msk.mxu1 %vm822_vm8, %v767_v58  ;;  %vm563_vm2 = vmand %vm473_vm15, %vm485_vm3 }
  0xce   : > { %v653_v60 = vpop.permute.xlu1 %652  ;;  %2185 = vmatpush1.msk.msra.mxu1 %vm822_vm8, %v766_v56  ;;  %v651_v61 = vpop.permute.xlu0 %650 }
  0xcf   : > { %v657_v20 = vsel %vm654_vm9, %v2984_v26, %v651_v61  ;;  %v658_v62 = vsel %vm654_vm9, %v651_v61, %v653_v60  ;;  %v816_v26 = vrot.slane %v731_v24, 4 }
  0xd0   : > { %v666_v4 = vsel %vm485_vm3, %v658_v62, 0.0  ;;  %v665_v6 = vsel %vm484_vm13, %v657_v20, 0.0 }
  0xd1   : > { %v805_v10 = vrot.slane %v666_v4, 4  ;;  %v804_v13 = vrot.slane %v665_v6, 4  ;;  %v3240_v6 = vld [vmem:[#allocation4 + $0x20] sm:$0xff] }
  0xd2   : > { %v688_v3 = vpop.permute.xlu1 %687  ;;  %v686_v2 = vpop.permute.xlu0 %685 }
  0xd3   : > { %v692_v11 = vsel %vm689_vm11, %v2990_v32, %v686_v2  ;;  %v693_v12 = vsel %vm689_vm11, %v686_v2, %v688_v3  ;;  %v834_v28 = vsel %vm822_vm8, %v2935_v7, %v805_v10  ;;  %v833_v32 = vsel %vm822_vm8, %v2891_v1, %v804_v13  ;;  %v1110_v2 = vld [vmem:[%s3836_s3 + $0xf8] sm:$0xff]  ;;  %v1109_v10 = vld [vmem:[%s3836_s3 + $0xf0] sm:$0xff]  ;;  %v1092_v13 = vld [vmem:[%s3836_s3 + $0x68] sm:$0xff] }
  0xd4   : > { %v700_v15 = vsel %vm669_vm5, %v692_v11, 0.0  ;;  %v701_v16 = vsel %vm670_vm7, %v693_v12, 0.0  ;;  %vm472_vm11 = vcmp.ge.s32.totalorder %v3085_v19, 1  ;;  %v1093_v11 = vld [vmem:[%s3836_s3 + $0x70] sm:$0xff]  ;;  %2221 = vmatprep.subr.mxu0 %v1110_v2  ;;  %v1108_v12 = vld [vmem:[%s3836_s3 + $0xe8] sm:$0xff]  ;;  %vm1279_vm5 = vcmask 72704  }
  0xd5   : > { %v838_v17 = vsel %vm822_vm8, %v701_v16, %v817_v9  ;;  %v837_v21 = vsel %vm822_vm8, %v700_v15, %v816_v26  ;;  %vm3169_vm4 = vmand %vm472_vm11, %vm484_vm13  ;;  %v1094_v9 = vld [vmem:[%s3836_s3 + $0x78] sm:$0xff]  ;;  %v1107_v15 = vld [vmem:[%s3836_s3 + $0xe0] sm:$0xff]  ;;  %1460 = vst.msk [vmem:[#allocation5 + $0x8] sm:$0xff] %vm1279_vm5, %v2742_v0  ;;  %vm1372_vm7 = vcmask 588800  }
  0xd6   : > { %v612_v25 = vpop.permute.xlu1 %611  ;;  %957 = vmatprep.subr.mxu1 %v838_v17  ;;  %v610_v27 = vpop.permute.xlu0 %609  ;;  %vm3193_vm13 = vmand %vm472_vm11, %vm480_vm10  ;;  %2222 = vmatpush3.msra.mxu0 %v1094_v9  ;;  %v1091_v16 = vld [vmem:[%s3836_s3 + $0x60] sm:$0xff]  ;;  %v1106_v17 = vld [vmem:[%s3836_s3 + $0xd8] sm:$0xff]  ;;  %1461 = vst.msk [vmem:[#allocation5 + $0x18] sm:$0xff] %vm1279_vm5, %v2742_v0 }
  0xd7   : > { %958 = vmatpush1.msra.mxu1 %v837_v21  ;;  %v616_v29 = vsel %vm613_vm1, %v3028_v57, %v610_v27  ;;  %v617_v30 = vsel %vm613_vm1, %v610_v27, %v612_v25  ;;  %2223 = vmatprep.subr.mxu0 %v1109_v10  ;;  %v1090_v21 = vld [vmem:[%s3836_s3 + $0x58] sm:$0xff]  ;;  %v1105_v25 = vld [vmem:[%s3836_s3 + $0xd0] sm:$0xff]  ;;  %v1100_v1 = vld [vmem:[%s3836_s3 + $0xa8] sm:$0xff] }
  0xd8   : > { %959 = vmatprep.subr.mxu1 %v834_v28  ;;  %v624_v34 = vsel %vm480_vm10, %v616_v29, 0.0  ;;  %v625_v7 = vsel %vm481_vm0, %v617_v30, 0.0  ;;  %vm3833_vm10 = vcmask 138240   ;;  %2224 = vmatpush3.msra.mxu0 %v1093_v11  ;;  %v1089_v27 = vld [vmem:[%s3836_s3 + $0x50] sm:$0xff]  ;;  %v1104_v28 = vld [vmem:[%s3836_s3 + $0xc8] sm:$0xff]  ;;  %v1103_v29 = vld [vmem:[%s3836_s3 + $0xc0] sm:$0xff] }
  0xd9   : > { %960 = vmatpush1.msra.mxu1 %v833_v32  ;;  %v786_v39 = vrot.slane %v624_v34, 4  ;;  %v787_v41 = vrot.slane %v625_v7, 4  ;;  %vm3834_vm3 = vmmov %vm3833_vm10  ;;  %2225 = vmatprep.subr.mxu0 %v1108_v12  ;;  %v1088_v32 = vld [vmem:[%s3836_s3 + $0x48] sm:$0xff]  ;;  %v1087_v30 = vld [vmem:[%s3836_s3 + $0x40] sm:$0xff] }
  0xda   : > { %v546_v31 = vpop.permute.xlu1 %545  ;;  %v544_v33 = vpop.permute.xlu0 %543  ;;  %2226 = vmatpush3.msra.mxu0 %v1092_v13  ;;  %v1101_v34 = vld [vmem:[%s3836_s3 + $0xb0] sm:$0xff] }
  0xdb   : > { %v550_v57 = vsel %vm547_vm14, %v3036_v5, %v544_v33  ;;  %v551_v35 = vsel %vm547_vm14, %v544_v33, %v546_v31  ;;  %2227 = vmatprep.subr.mxu0 %v1107_v15  ;;  %v1102_v31 = vld [vmem:[%s3836_s3 + $0xb8] sm:$0xff]  ;;  %v1085_v7 = vld [vmem:[%s3836_s3 + $0x30] sm:$0xff] }
  0xdc   : > { %v558_v23 = vsel %vm472_vm11, %v550_v57, 0.0  ;;  %v559_v5 = vsel %vm473_vm15, %v551_v35, 0.0  ;;  %2228 = vmatpush3.msra.mxu0 %v1091_v16  ;;  %v1086_v33 = vld [vmem:[%s3836_s3 + $0x38] sm:$0xff]  ;;  %v1084_v57 = vld [vmem:[%s3836_s3 + $0x28] sm:$0xff]  ;;  %v1099_v35 = vld [vmem:[%s3836_s3 + $0xa0] sm:$0xff] }
  0xdd   : > { %v774_v38 = vrot.slane %v558_v23, 4  ;;  %v775_v51 = vrot.slane %v559_v5, 4  ;;  %2229 = vmatprep.subr.mxu0 %v1106_v17  ;;  %v1080_v23 = vld [vmem:[%s3836_s3 + $0x8] sm:$0xff] }
  0xde   : > { %v581_v36 = vpop.permute.xlu1 %580  ;;  %v579_v37 = vpop.permute.xlu0 %578  ;;  %2230 = vmatpush3.msra.mxu0 %v1090_v21 }
  0xdf   : > { %v585_v42 = vsel %vm582_vm6, %v3046_v8, %v579_v37  ;;  %v586_v43 = vsel %vm582_vm6, %v579_v37, %v581_v36  ;;  %vm492_vm6 = vmand %vm473_vm15, %vm481_vm0  ;;  %vm3835_vm0 = vcmask 293888   ;;  %2231 = vmatprep.subr.mxu0 %v1105_v25  ;;  %v1083_v36 = vld [vmem:[%s3836_s3 + $0x20] sm:$0xff]  ;;  %v1098_v37 = vld [vmem:[%s3836_s3 + $0x98] sm:$0xff] }
  0xe0   : > { %v593_v22 = vsel %vm3169_vm4, %v585_v42, 0.0  ;;  %v594_v44 = vsel %vm563_vm2, %v586_v43, 0.0  ;;  %2232 = vmatpush3.msra.mxu0 %v1089_v27  ;;  %v1081_v42 = vld [vmem:[%s3836_s3 + $0x10] sm:$0xff]  ;;  %v1096_v43 = vld [vmem:[%s3836_s3 + $0x88] sm:$0xff]  ;;  %vm1354_vm4 = vcmask 973824  }
  0xe1   : > { %v830_v8 = vsel %vm822_vm8, %v594_v44, %v787_v41  ;;  %v829_v47 = vsel %vm822_vm8, %v593_v22, %v786_v39  ;;  %2233 = vmatprep.subr.mxu0 %v1104_v28  ;;  %v1082_v39 = vld [vmem:[%s3836_s3 + $0x18] sm:$0xff]  ;;  %v1097_v41 = vld [vmem:[%s3836_s3 + $0x90] sm:$0xff]  ;;  %v1095_v22 = vld [vmem:[%s3836_s3 + $0x80] sm:$0xff] }
  0xe2   : > { %v515_v49 = vpop.permute.xlu1 %514  ;;  %961 = vmatprep.subr.mxu1 %v830_v8  ;;  %v513_v50 = vpop.permute.xlu0 %512  ;;  %2234 = vmatpush3.msra.mxu0 %v1088_v32  ;;  %v1079_v44 = vld [vmem:[%s3836_s3] sm:$0xff]  ;;  %s1988_s3 = sshll.u32 %s3384_s19, 4  ;;  %s1989_s3 = int_to_ptr.vmem [resolvable:$true] %s1988_s3 }
  0xe3   : > { %v519_v19 = vsel %vm3833_vm10, %v3083_v40, %v513_v50  ;;  %v520_v52 = vsel %vm3834_vm3, %v513_v50, %v515_v49  ;;  %962 = vmatpush1.msra.mxu1 %v829_v47  ;;  %2235 = vmatprep.subr.mxu0 %v1103_v29  ;;  %vm1333_vm10 = vcmask 990208  }
  0xe4   : > { %v527_v18 = vsel %vm3193_vm13, %v519_v19, 0.0  ;;  %v528_v53 = vsel %vm492_vm6, %v520_v52, 0.0  ;;  %2236 = vmatpush3.msra.mxu0 %v1087_v30  ;;  %vm1343_vm13 = vcmask 982016  }
  0xe5   : > { %v826_v45 = vsel %vm822_vm8, %v528_v53, %v775_v51  ;;  %v825_v54 = vsel %vm822_vm8, %v527_v18, %v774_v38  ;;  %2237 = vmatprep.subr.mxu0 %v1102_v31  ;;  %vm1255_vm8 = vcmask 523264  }
  0xe6   : > { %963 = vmatprep.subr.mxu1 %v826_v45  ;;  %2238 = vmatpush3.msra.mxu0 %v1086_v33 }
  0xe7   : > { %964 = vmatpush1.msra.mxu1 %v825_v54  ;;  %2239 = vmatprep.subr.mxu0 %v1101_v34 }
  0xe8   : > { %2186 = vmatmul.mubr.msk.f32.vlgmr.msra.gmra.mxu1 %vm3835_vm0, %v3101_v48  ;;  %2256 = vmatprep.subr.mxu1 %v1110_v2 }
  0xe9   : > { %2257 = vmatpush3.msra.mxu1 %v1094_v9  ;;  %2240 = vmatpush3.msra.mxu0 %v1085_v7 }
  0xea   : > { %2258 = vmatprep.subr.mxu1 %v1109_v10  ;;  %2241 = vmatprep.subr.mxu0 %v1100_v1 }
  0xeb   : > { %2259 = vmatpush3.msra.mxu1 %v1093_v11  ;;  %2242 = vmatpush3.msra.mxu0 %v1084_v57 }
  0xec   : > { %2260 = vmatprep.subr.mxu1 %v1108_v12  ;;  %2243 = vmatprep.subr.mxu0 %v1099_v35 }
  0xed   : > { %2261 = vmatpush3.msra.mxu1 %v1092_v13  ;;  %2244 = vmatpush3.msra.mxu0 %v1083_v36 }
  0xee   : > { %2262 = vmatprep.subr.mxu1 %v1107_v15  ;;  %2245 = vmatprep.subr.mxu0 %v1098_v37 }
  0xef   : > { %v844_v40 = vpop.permute.xlu0 %843  ;;  %2263 = vmatpush3.msra.mxu1 %v1091_v16  ;;  %2246 = vmatpush3.msra.mxu0 %v1082_v39 }
  0xf0   : > { %2264 = vmatprep.subr.mxu1 %v1106_v17  ;;  %2247 = vmatprep.subr.mxu0 %v1097_v41 }
  0xf1   : > { %2265 = vmatpush3.msra.mxu1 %v1090_v21  ;;  %2248 = vmatpush3.msra.mxu0 %v1081_v42 }
  0xf2   : > { %2266 = vmatprep.subr.mxu1 %v1105_v25  ;;  %2249 = vmatprep.subr.mxu0 %v1096_v43 }
  0xf3   : > { %2267 = vmatpush3.msra.mxu1 %v1089_v27  ;;  %2250 = vmatpush3.msra.mxu0 %v1080_v23  ;;  %v1358_v27 = vld [vmem:[%s3840_s4] sm:$0xff] }
  0xf4   : > { %2268 = vmatprep.subr.mxu1 %v1104_v28  ;;  %2251 = vmatprep.subr.mxu0 %v1095_v22  ;;  %v1361_v28 = vld [vmem:[%s3841_s5 + $0x8] sm:$0xff] }
  0xf5   : > { %2269 = vmatpush3.msra.mxu1 %v1088_v32  ;;  %2252 = vmatpush3.msra.mxu0 %v1079_v44  ;;  %v1360_v32 = vld [vmem:[%s3841_s5] sm:$0xff]  ;;  %s2762_s5 = smov 96  }
  0xf6   : > { %2270 = vmatprep.subr.mxu1 %v1103_v29 }
  0xf7   : > { %2271 = vmatpush3.msra.mxu1 %v1087_v30 }
  0xf8   : > { %2272 = vmatprep.subr.mxu1 %v1102_v31  ;;  %v1261_v31 = vand.u32 63, %v2956_v14 }
  0xf9   : > { %2273 = vmatpush3.msra.mxu1 %v1086_v33 }
  0xfa   : > { %2274 = vmatprep.subr.mxu1 %v1101_v34  ;;  %v1262_v33 = vshra.s32 %v1261_v31, 3  ;;  %v1263_v34 = vand.u32 7, %v1261_v31 }
  0xfb   : > { %2275 = vmatpush3.msra.mxu1 %v1085_v7 }
  0xfc   : > { %2276 = vmatprep.subr.mxu1 %v1100_v1  ;;  %vm1265_vm11 = vcmp.le.s32.totalorder %v1262_v33, 6  ;;  %vm1267_vm15 = vcmp.le.s32.totalorder %v1263_v34, 6  ;;  %vm1266_vm6 = vcmp.ge.s32.totalorder %v1263_v34, 1  ;;  %vm1264_vm0 = vcmp.ge.s32.totalorder %v1262_v33, 1 }
  0xfd   : > { %2277 = vmatpush3.msra.mxu1 %v1084_v57  ;;  %vm1347_vm2 = vmand %vm1265_vm11, %vm1267_vm15 }
  0xfe   : > { %2278 = vmatprep.subr.mxu1 %v1099_v35  ;;  %vm1326_vm3 = vmand %vm1265_vm11, %vm1266_vm6 }
  0xff   : > { %2279 = vmatpush3.msra.mxu1 %v1083_v36 }
 0x100   : > { %2280 = vmatprep.subr.mxu1 %v1098_v37 }
 0x101   : > { %2281 = vmatpush3.msra.mxu1 %v1082_v39 }
 0x102   : > { %2282 = vmatprep.subr.mxu1 %v1097_v41 }
 0x103   : > { %2283 = vmatpush3.msra.mxu1 %v1081_v42 }
 0x104   : > { %2284 = vmatprep.subr.mxu1 %v1096_v43 }
 0x105   : > { %2285 = vmatpush3.msra.mxu1 %v1080_v23 }
 0x106   : > { %2286 = vmatprep.subr.mxu1 %v1095_v22 }
 0x107   : > { %2287 = vmatpush3.msra.mxu1 %v1079_v44 }
 0x188   : > { %v928_v55 = vpop.f32.mrf.mxu1 }
 0x189   : > { %v3216_v56 = vadd.f32 %v928_v55, %v844_v40 }
 0x18a   : > { %v930_v58 = vpop.f32.mrf.mxu1 }
 0x18b   : > { %v3218_v59 = vadd.f32 %v930_v58, %v844_v40  ;;  %1004 = vst [vmem:[%s3220_s28] sm:$0xff] %v3216_v56  ;;  %v1009_v48 = vmax.f32 %v3216_v56, 0.0 }
 0x18d   : > { %1005 = vst [vmem:[%s3220_s28 + $0x8] sm:$0xff] %v3218_v59  ;;  %v1010_v60 = vmax.f32 %v3218_v59, 0.0 }
 0x18f   : > { %v2499_v61 = vpack.i.bf16 %v1009_v48, %v1010_v60 }
 0x191   : > { %2500 = vrot.lane.b32.xlu0 %v2499_v61, %s3805_s29  ;;  %s2755_s29 = smov 121  }
 0x1a8   : > { %v999_v24 = vpop.f32.mrf.mxu1 }
 0x1a9   : > { %v3233_v20 = vadd.f32 %v999_v24, %v844_v40 }
 0x1aa   : > { %v1001_v62 = vpop.f32.mrf.mxu1 }
 0x1ab   : > { %2187 = vst [vmem:[%s3220_s28 + $0x10] sm:$0xff] %v3233_v20  ;;  %v1011_v63 = vmax.f32 %v3233_v20, 0.0  ;;  %v3238_v4 = vadd.f32 %v1001_v62, %v844_v40 }
 0x1ad   : > { %2188 = vst [vmem:[%s3220_s28 + $0x18] sm:$0xff] %v3238_v4  ;;  %v1012_v26 = vmax.f32 %v3238_v4, 0.0 }
 0x1af   : > { %v2494_v3 = vpack.i.bf16 %v3240_v6, %v1012_v26 }
 0x1b1   : > { %2495 = vrot.lane.b32.xlu1 %v2494_v3, %s3837_s1 }
 0x1b5   : > { %1032 = vrot.lane.b32.xlu1 %v1011_v63, %s3837_s1 }
 0x203   : > { %v2501_v5 = vpop.permute.xlu0 %2500 }
 0x204   : > { %v2503_v8 = vunpack.i.h.bf16 %v2501_v5  ;;  %v2502_v47 = vunpack.i.l.bf16 %v2501_v5 }
 0x206   : > { %v1038_v18 = vsel %vm654_vm9, %v2503_v8, %v2502_v47 }
 0x207   : > { %v1046_v58 = vmax.f32 %v1009_v48, %v1038_v18 }
 0x223   : > { %v2496_v46 = vpop.permute.xlu1 %2495 }
 0x224   : > { %v2498_v49 = vunpack.i.h.bf16 %v2496_v46  ;;  %v2497_v50 = vunpack.i.l.bf16 %v2496_v46 }
 0x226   : > { %v1051_v38 = vmax.f32 %v3240_v6, %v2498_v49  ;;  %v1041_v51 = vsel %vm654_vm9, %v2497_v50, %v2498_v49 }
 0x227   : > { %v1033_v19 = vpop.permute.xlu1 %1032  ;;  %v1049_v52 = vmax.f32 %v1012_v26, %v1041_v51  ;;  %v1359_v51 = vld [vmem:[%s3840_s4 + $0x8] sm:$0xff]  ;;  %s2761_s4 = smov 80  }
 0x228   : > { %v1039_v53 = vsel %vm654_vm9, %v2502_v47, %v1033_v19  ;;  %v1040_v45 = vsel %vm654_vm9, %v1033_v19, %v2497_v50  ;;  %v1464_v19 = vld [vmem:[#allocation5 + $0x8] sm:$0xff] }
 0x229   : > { %v1047_v54 = vmax.f32 %v1010_v60, %v1039_v53  ;;  %v1048_v40 = vmax.f32 %v1011_v63, %v1040_v45  ;;  %v2504_v55 = vpack.i.bf16 %v1051_v38, %v1049_v52 }
 0x22b   : > { %2505 = vrot.lane.b32.xlu1 %v2504_v55, %s3838_s17  ;;  %1061 = vrot.lane.b32.xlu0 %v1048_v40, %s3838_s17  ;;  %v2509_v61 = vpack.i.bf16 %v1046_v58, %v1047_v54 }
 0x22f   : > { %2510 = vrot.lane.b32.xlu1 %v2509_v61, %s3838_s17 }
 0x233   : > { %1306 = vrot.lane.b32.xlu1 %v2742_v0, %s3839_s15 }
 0x29d   : > { %v2506_v24 = vpop.permute.xlu1 %2505  ;;  %v1062_v62 = vpop.permute.xlu0 %1061 }
 0x29e   : > { %v2508_v59 = vunpack.i.h.bf16 %v2506_v24  ;;  %v2507_v60 = vunpack.i.l.bf16 %v2506_v24  ;;  %v1513_v24 = vld [vmem:[%s3843_s6 + $0x38] sm:$0xff] }
 0x29f   : > { %2378 = vmatprep.subr.mxu1 %v1513_v24 }
 0x2a0   : > { %v1069_v20 = vsel %vm720_vm12, %v1062_v62, %v2507_v60  ;;  %v1070_v63 = vsel %vm720_vm12, %v2507_v60, %v2508_v59  ;;  %v1512_v59 = vld [vmem:[%s3843_s6 + $0x30] sm:$0xff] }
 0x2a1   : > { %v1077_v4 = vmax.f32 %v1048_v40, %v1069_v20  ;;  %v2511_v6 = vpop.permute.xlu1 %2510  ;;  %v1078_v26 = vmax.f32 %v1049_v52, %v1070_v63  ;;  %v1465_v52 = vld [vmem:[#allocation5 + $0x18] sm:$0xff]  ;;  %v1511_v63 = vld [vmem:[%s3843_s6 + $0x28] sm:$0xff] }
 0x2a2   : > { %v2513_v3 = vunpack.i.h.bf16 %v2511_v6  ;;  %v2512_v56 = vunpack.i.l.bf16 %v2511_v6  ;;  %v1510_v6 = vld [vmem:[%s3843_s6 + $0x20] sm:$0xff] }
 0x2a3   : > { %1245 = vmatprep.mubr.f32.mxu1 %v1078_v26  ;;  %v1509_v26 = vld [vmem:[%s3843_s6 + $0x18] sm:$0xff] }
 0x2a4   : > { %1246 = vmatmul.mubr.f32.vlgmr.msra.gmra.mxu1 %v1077_v4  ;;  %v1068_v48 = vsel %vm720_vm12, %v2512_v56, %v1062_v62  ;;  %v1067_v2 = vsel %vm720_vm12, %v2513_v3, %v2512_v56  ;;  %v1508_v3 = vld [vmem:[%s3843_s6 + $0x10] sm:$0xff]  ;;  %v1507_v56 = vld [vmem:[%s3843_s6 + $0x8] sm:$0xff] }
 0x2a5   : > { %v1076_v9 = vmax.f32 %v1047_v54, %v1068_v48  ;;  %v1075_v10 = vmax.f32 %v1046_v58, %v1067_v2  ;;  %v1307_v1 = vpop.permute.xlu1 %1306  ;;  %2379 = vmatpush3.msra.mxu1 %v1513_v24  ;;  %v1506_v48 = vld [vmem:[%s3843_s6] sm:$0xff]  ;;  %s2760_s6 = smov 48  }
 0x2a6   : > { %2380 = vmatprep.subr.mxu1 %v1512_v59 }
 0x2a7   : > { %1175 = vmatprep.mubr.f32.mxu0 %v1076_v9  ;;  %2381 = vmatpush3.msra.mxu1 %v1512_v59 }
 0x2a8   : > { %1176 = vmatmul.mubr.f32.vlgmr.msra.gmra.mxu0 %v1075_v10  ;;  %2382 = vmatprep.subr.mxu1 %v1511_v63 }
 0x2a9   : > { %2375 = vmatprep.mubr.msk.f32.mxu0 %vm1372_vm7, %v1358_v27  ;;  %2383 = vmatpush3.msra.mxu1 %v1511_v63 }
 0x2aa   : > { %2384 = vmatprep.subr.mxu1 %v1510_v6 }
 0x2ab   : > { %2385 = vmatpush3.msra.mxu1 %v1510_v6 }
 0x2ac   : > { %2386 = vmatprep.subr.mxu1 %v1509_v26 }
 0x2ad   : > { %2387 = vmatpush3.msra.mxu1 %v1509_v26 }
 0x2ae   : > { %2388 = vmatprep.subr.mxu1 %v1508_v3 }
 0x2af   : > { %2389 = vmatpush3.msra.mxu1 %v1508_v3 }
 0x2b0   : > { %2390 = vmatprep.subr.mxu1 %v1507_v56 }
 0x2b1   : > { %2391 = vmatpush3.msra.mxu1 %v1507_v56 }
 0x2b2   : > { %2392 = vmatprep.subr.mxu1 %v1506_v48 }
 0x2b3   : > { %2393 = vmatpush3.msra.mxu1 %v1506_v48 }
 0x2b4   : > { %2397 = vmatprep.subr.mxu1 %v1513_v24 }
 0x364   : > { %v2288_v11 = vpop.f32.mrf.mxu1 }
 0x366   : > { %v2289_v12 = vpop.f32.mrf.mxu1 }
 0x367   : > { %v2290_v13 = vadd.f32 %v2289_v12, %v2288_v11 }
 0x368   : > { %v2253_v15 = vpop.f32.mrf.mxu0 }
 0x369   : > { %1252 = vrot.lane.b32.xlu0 %v2290_v13, %s3807_s20  ;;  %s3811_s20 = smov 8  }
 0x36a   : > { %v2254_v16 = vpop.f32.mrf.mxu0 }
 0x36b   : > { %v2255_v17 = vadd.f32 %v2254_v16, %v2253_v15 }
 0x36d   : > { %1352 = vrot.lane.b32.xlu0 %v2742_v0, %s2753_s16 }
 0x371   : > { %1341 = vrot.lane.b32.xlu0 %v2742_v0, %s3809_s0 }
 0x375   : > { %1331 = vrot.lane.b32.xlu0 %v2742_v0, %s2755_s29 }
 0x379   : > { %1321 = vrot.lane.b32.xlu0 %v2742_v0, %s3837_s1 }
 0x3db   : > { %v1253_v21 = vpop.permute.xlu0 %1252 }
 0x3dc   : > { %v3379_v25 = vsel %vm1255_vm8, %v2255_v17, %v1253_v21 }
 0x3dd   : > { %1308 = vrot.lane.b32.xlu0 %v3379_v25, %s3839_s15  ;;  %1350 = vrot.lane.b32.xlu1 %v3379_v25, %s2753_s16  ;;  %1257 = vst [vmem:[%s3384_s19] sm:$0xff] %v3379_v25  ;;  %s2758_s15 = smov 9   ;;  %s2759_s16 = smov 32  }
 0x3df   : > { %v1353_v29 = vpop.permute.xlu0 %1352 }
 0x3e1   : > { %1298 = vrot.lane.b32.xlu0 %v3379_v25, %s2756_s26  ;;  %1339 = vrot.lane.b32.xlu1 %v3379_v25, %s3809_s0  ;;  %s3842_s0 = smov 120  }
 0x3e3   : > { %v1342_v30 = vpop.permute.xlu0 %1341 }
 0x3e5   : > { %1287 = vrot.lane.b32.xlu0 %v3379_v25, %s3811_s20  ;;  %1329 = vrot.lane.b32.xlu1 %v3379_v25, %s2755_s29 }
 0x3e7   : > { %v1332_v7 = vpop.permute.xlu0 %1331 }
 0x3e9   : > { %1277 = vrot.lane.b32.xlu0 %v3379_v25, %s2758_s15  ;;  %1319 = vrot.lane.b32.xlu1 %v3379_v25, %s3837_s1 }
 0x3ed   : > { %1369 = vperm.xlu0 %2493, %v1361_v28   ;;  %1296 = vrot.lane.b32.xlu1 %v2742_v0, %s2756_s26  ;;  %s2175_s26 = sshll.u32 %s3213_s18, 4 }
 0x3f1   : > { %1285 = vrot.lane.b32.xlu1 %v2742_v0, %s3811_s20  ;;  %1472 = vrot.lane.b32.xlu0 %v1464_v19, %s3837_s1  ;;  %s3456_s20 = scalar_lea.vmem [#allocation10], %s2175_s26 }
 0x3f5   : > { %1275 = vrot.lane.b32.xlu1 %v2742_v0, %s2758_s15  ;;  %v1322_v0 = vpop.permute.xlu0 %1321  ;;  %1476 = vrot.lane.b32.xlu0 %v1465_v52, %s3837_s1 }
 0x3f9   : > { %1364 = vperm.xlu1 %2514, %v1360_v32  }
 0x44f   : > { %v1351_v57 = vpop.permute.xlu1 %1350  ;;  %v1309_v37 = vpop.permute.xlu0 %1308 }
 0x450   : > { %v1355_v35 = vsel %vm1354_vm4, %v1351_v57, %v1353_v29  ;;  %vm1300_vm4 = vcmask 56320   ;;  %v1310_v22 = vsel %vm613_vm1, %v1307_v1, %v1309_v37  ;;  %vm1270_vm1 = vmand %vm1264_vm0, %vm1266_vm6  ;;  %v1846_v57 = vld [vmem:[%s3790_s7 + $0x78] sm:$0xff]  ;;  %v1844_v37 = vld [vmem:[%s3790_s7 + $0x68] sm:$0xff] }
 0x451   : > { %2357 = vmatprep.subr.msk.mxu0 %vm1347_vm2, %v1355_v35 }
 0x452   : > { %2358 = vmatpush3.msk.msra.mxu0 %vm1347_vm2, %v1355_v35  ;;  %vm1289_vm2 = vcmask 64512   ;;  %v1861_v35 = vld [vmem:[%s3790_s7 + $0xf0] sm:$0xff] }
 0x453   : > { %v1340_v36 = vpop.permute.xlu1 %1339  ;;  %v1299_v42 = vpop.permute.xlu0 %1298 }
 0x454   : > { %v1344_v14 = vsel %vm1343_vm13, %v1340_v36, %v1342_v30  ;;  %v1845_v36 = vld [vmem:[%s3790_s7 + $0x70] sm:$0xff] }
 0x455   : > { %2359 = vmatprep.subr.msk.mxu0 %vm1265_vm11, %v1344_v14 }
 0x456   : > { %2360 = vmatpush3.msk.msra.mxu0 %vm1265_vm11, %v1344_v14  ;;  %vm1293_vm11 = vmand %vm1264_vm0, %vm1267_vm15  ;;  %v1860_v14 = vld [vmem:[%s3790_s7 + $0xe8] sm:$0xff] }
 0x457   : > { %v1330_v39 = vpop.permute.xlu1 %1329  ;;  %v1288_v44 = vpop.permute.xlu0 %1287 }
 0x458   : > { %v1334_v41 = vsel %vm1333_vm10, %v1330_v39, %v1332_v7  ;;  %v1859_v39 = vld [vmem:[%s3790_s7 + $0xe0] sm:$0xff] }
 0x459   : > { %2361 = vmatprep.subr.msk.mxu0 %vm1326_vm3, %v1334_v41 }
 0x45a   : > { %2362 = vmatpush3.msk.msra.mxu0 %vm1326_vm3, %v1334_v41 }
 0x45b   : > { %v1320_v43 = vpop.permute.xlu1 %1319  ;;  %v1278_v49 = vpop.permute.xlu0 %1277 }
 0x45c   : > { %v1323_v23 = vsel %vm654_vm9, %v1320_v43, %v1322_v0  ;;  %v1862_v0 = vld [vmem:[%s3790_s7 + $0xf8] sm:$0xff] }
 0x45d   : > { %2363 = vmatprep.subr.msk.mxu0 %vm1267_vm15, %v1323_v23 }
 0x45e   : > { %2364 = vmatpush3.msk.msra.mxu0 %vm1267_vm15, %v1323_v23  ;;  %v1843_v23 = vld [vmem:[%s3790_s7 + $0x60] sm:$0xff]  ;;  %vm1754_vm15 = vcmask 785408  }
 0x45f   : > { %2365 = vmatprep.subr.mxu0 %v3379_v25  ;;  %v1297_v5 = vpop.permute.xlu1 %1296 }
 0x460   : > { %2366 = vmatpush3.msra.mxu0 %v3379_v25  ;;  %v1301_v46 = vsel %vm1300_vm4, %v1297_v5, %v1299_v42  ;;  %v1858_v5 = vld [vmem:[%s3790_s7 + $0xd8] sm:$0xff] }
 0x461   : > { %2367 = vmatprep.subr.msk.mxu0 %vm1266_vm6, %v1310_v22 }
 0x462   : > { %2368 = vmatpush3.msk.msra.mxu0 %vm1266_vm6, %v1310_v22 }
 0x463   : > { %2369 = vmatprep.subr.msk.mxu0 %vm1293_vm11, %v1301_v46  ;;  %v1286_v8 = vpop.permute.xlu1 %1285 }
 0x464   : > { %v1290_v47 = vsel %vm1289_vm2, %v1286_v8, %v1288_v44  ;;  %2370 = vmatpush3.msk.msra.mxu0 %vm1293_vm11, %v1301_v46  ;;  %v1842_v46 = vld [vmem:[%s3790_s7 + $0x58] sm:$0xff]  ;;  %v1857_v8 = vld [vmem:[%s3790_s7 + $0xd0] sm:$0xff] }
 0x465   : > { %2371 = vmatprep.subr.msk.mxu0 %vm1264_vm0, %v1290_v47 }
 0x466   : > { %2372 = vmatpush3.msk.msra.mxu0 %vm1264_vm0, %v1290_v47 }
 0x467   : > { %v1276_v50 = vpop.permute.xlu1 %1275 }
 0x468   : > { %v1280_v38 = vsel %vm1279_vm5, %v1276_v50, %v1278_v49  ;;  %v1370_v18 = vpop.permute.xlu0 %1369  ;;  %vm1749_vm5 = vcmask 392192  }
 0x469   : > { %2373 = vmatprep.subr.msk.mxu0 %vm1270_vm1, %v1280_v38 }
 0x46a   : > { %2374 = vmatpush3.msk.msra.mxu0 %vm1270_vm1, %v1280_v38 }
 0x46b   : > { %2376 = vmatmul.mubr.msk.f32.vlgmr.msra.gmra.mxu0 %vm1372_vm7, %v1359_v51  ;;  %2322 = vmatprep.subr.mxu0 %v1862_v0  ;;  %vm1752_vm7 = vcmask 654336  }
 0x46c   : > { %v1473_v53 = vpop.permute.xlu0 %1472  ;;  %2323 = vmatpush3.msra.mxu0 %v1846_v57 }
 0x46d   : > { %v1486_v45 = vmax.f32 %v1464_v19, %v1473_v53  ;;  %2324 = vmatprep.subr.mxu0 %v1861_v35  ;;  %v1841_v19 = vld [vmem:[%s3790_s7 + $0x50] sm:$0xff] }
 0x46e   : > { %2325 = vmatpush3.msra.mxu0 %v1845_v36 }
 0x46f   : > { %1494 = vrot.lane.b32.xlu0 %v1486_v45, %s3842_s0  ;;  %2326 = vmatprep.subr.mxu0 %v1860_v14  ;;  %v1840_v45 = vld [vmem:[%s3790_s7 + $0x48] sm:$0xff] }
 0x470   : > { %v1477_v54 = vpop.permute.xlu0 %1476  ;;  %2327 = vmatpush3.msra.mxu0 %v1844_v37 }
 0x471   : > { %v1487_v40 = vmax.f32 %v1465_v52, %v1477_v54  ;;  %2328 = vmatprep.subr.mxu0 %v1859_v39  ;;  %v1856_v52 = vld [vmem:[%s3790_s7 + $0xc8] sm:$0xff] }
 0x472   : > { %2329 = vmatpush3.msra.mxu0 %v1843_v23 }
 0x473   : > { %1498 = vrot.lane.b32.xlu0 %v1487_v40, %s3842_s0  ;;  %2330 = vmatprep.subr.mxu0 %v1858_v5 }
 0x474   : > { %v1365_v58 = vpop.permute.xlu1 %1364  ;;  %2331 = vmatpush3.msra.mxu0 %v1842_v46 }
 0x475   : > { %2332 = vmatprep.subr.mxu0 %v1857_v8 }
 0x476   : > { %2333 = vmatpush3.msra.mxu0 %v1841_v19 }
 0x477   : > { %2334 = vmatprep.subr.mxu0 %v1856_v52 }
 0x478   : > { %2335 = vmatpush3.msra.mxu0 %v1840_v45 }
 0x4e1   : > { %v1495_v15 = vpop.permute.xlu0 %1494 }
 0x4e5   : > { %v1499_v25 = vpop.permute.xlu0 %1498 }
 0x52b   : > { %v2377_v55 = vpop.f32.mrf.mxu0 }
 0x52c   : > { %v1451_v61 = vadd.f32 %v2377_v55, %v1370_v18 }
 0x52d   : > { %v1445_v60 = vpop.f32.mrf.mxu0 }
 0x52e   : > { %v1455_v62 = vmax.f32 %v1451_v61, 0.0  ;;  %v1446_v20 = vadd.f32 %v1445_v60, %v1365_v58  ;;  %v1839_v58 = vld [vmem:[%s3790_s7 + $0x40] sm:$0xff]  ;;  %v1854_v61 = vld [vmem:[%s3790_s7 + $0xb8] sm:$0xff] }
 0x52f   : > { %v1838_v60 = vld [vmem:[%s3790_s7 + $0x38] sm:$0xff] }
 0x530   : > { %1457 = vst [vmem:[%s3456_s20 + $0x8] sm:$0xff] %v1455_v62  ;;  %v1454_v4 = vmax.f32 %v1446_v20, 0.0 }
 0x532   : > { %1456 = vst [vmem:[%s3456_s20] sm:$0xff] %v1454_v4  ;;  %1470 = vrot.lane.b32.xlu1 %v1454_v4, %s3837_s1 }
 0x536   : > { %1474 = vrot.lane.b32.xlu1 %v1455_v62, %s3837_s1  ;;  %s3844_s1 = smov 64  }
 0x5a4   : > { %v1471_v2 = vpop.permute.xlu1 %1470 }
 0x5a5   : > { %v1478_v9 = vsel %vm654_vm9, %v1471_v2, %v1473_v53 }
 0x5a6   : > { %v1482_v10 = vmax.f32 %v1454_v4, %v1478_v9  ;;  %v1837_v4 = vld [vmem:[%s3790_s7 + $0x30] sm:$0xff] }
 0x5a8   : > { %1492 = vrot.lane.b32.xlu1 %v1482_v10, %s3842_s0  ;;  %v1475_v11 = vpop.permute.xlu1 %1474 }
 0x5a9   : > { %v1479_v12 = vsel %vm654_vm9, %v1475_v11, %v1477_v54  ;;  %v1855_v54 = vld [vmem:[%s3790_s7 + $0xc0] sm:$0xff]  ;;  %v1850_v11 = vld [vmem:[%s3790_s7 + $0x98] sm:$0xff]  ;;  %vm1747_vm9 = vcmask 261120  }
 0x5aa   : > { %v1483_v13 = vmax.f32 %v1455_v62, %v1479_v12  ;;  %2336 = vmatprep.subr.mxu0 %v1855_v54  ;;  %v1853_v62 = vld [vmem:[%s3790_s7 + $0xb0] sm:$0xff] }
 0x5ab   : > { %2337 = vmatpush3.msra.mxu0 %v1839_v58 }
 0x5ac   : > { %1496 = vrot.lane.b32.xlu1 %v1483_v13, %s3842_s0  ;;  %s3845_s0 = smov 16   ;;  %2338 = vmatprep.subr.mxu0 %v1854_v61 }
 0x5ad   : > { %2339 = vmatpush3.msra.mxu0 %v1838_v60 }
 0x5ae   : > { %2340 = vmatprep.subr.mxu0 %v1853_v62 }
 0x5af   : > { %2341 = vmatpush3.msra.mxu0 %v1837_v4 }
 0x61a   : > { %v1493_v16 = vpop.permute.xlu1 %1492 }
 0x61b   : > { %v1500_v17 = vsel %vm1343_vm13, %v1493_v16, %v1495_v15 }
 0x61c   : > { %v1504_v21 = vmax.f32 %v1482_v10, %v1500_v17  ;;  %v1835_v10 = vld [vmem:[%s3790_s7 + $0x20] sm:$0xff]  ;;  %v1834_v17 = vld [vmem:[%s3790_s7 + $0x18] sm:$0xff] }
 0x61e   : > { %1595 = vrot.lane.b32.xlu1 %v1504_v21, %s3844_s1  ;;  %2394 = vmatprep.mubr.msk.f32.mxu1 %vm1255_vm8, %v1504_v21  ;;  %v1497_v27 = vpop.permute.xlu1 %1496  ;;  %v1849_v21 = vld [vmem:[%s3790_s7 + $0x90] sm:$0xff] }
 0x61f   : > { %v1501_v28 = vsel %vm1343_vm13, %v1497_v27, %v1499_v25  ;;  %v1833_v25 = vld [vmem:[%s3790_s7 + $0x10] sm:$0xff]  ;;  %v1848_v27 = vld [vmem:[%s3790_s7 + $0x88] sm:$0xff] }
 0x620   : > { %v1505_v32 = vmax.f32 %v1483_v13, %v1501_v28 }
 0x622   : > { %1597 = vrot.lane.b32.xlu0 %v1505_v32, %s3844_s1  ;;  %2395 = vmatmul.mubr.msk.f32.vlgmr.msra.gmra.mxu1 %vm1255_vm8, %v1505_v32 }
 0x623   : > { %2398 = vmatpush3.msra.mxu1 %v1513_v24 }
 0x624   : > { %2399 = vmatprep.subr.mxu1 %v1512_v59 }
 0x625   : > { %2400 = vmatpush3.msra.mxu1 %v1512_v59 }
 0x626   : > { %2401 = vmatprep.subr.mxu1 %v1511_v63 }
 0x627   : > { %2402 = vmatpush3.msra.mxu1 %v1511_v63 }
 0x628   : > { %2403 = vmatprep.subr.mxu1 %v1510_v6 }
 0x629   : > { %2404 = vmatpush3.msra.mxu1 %v1510_v6  ;;  %v1852_v6 = vld [vmem:[%s3790_s7 + $0xa8] sm:$0xff] }
 0x62a   : > { %2405 = vmatprep.subr.mxu1 %v1509_v26  ;;  %2342 = vmatprep.subr.mxu0 %v1852_v6 }
 0x62b   : > { %2406 = vmatpush3.msra.mxu1 %v1509_v26 }
 0x62c   : > { %2407 = vmatprep.subr.mxu1 %v1508_v3 }
 0x62d   : > { %2408 = vmatpush3.msra.mxu1 %v1508_v3 }
 0x62e   : > { %2409 = vmatprep.subr.mxu1 %v1507_v56 }
 0x62f   : > { %2410 = vmatpush3.msra.mxu1 %v1507_v56  ;;  %v1836_v56 = vld [vmem:[%s3790_s7 + $0x28] sm:$0xff] }
 0x630   : > { %2411 = vmatprep.subr.mxu1 %v1506_v48  ;;  %2343 = vmatpush3.msra.mxu0 %v1836_v56 }
 0x631   : > { %2412 = vmatpush3.msra.mxu1 %v1506_v48  ;;  %v1851_v48 = vld [vmem:[%s3790_s7 + $0xa0] sm:$0xff] }
 0x632   : > { %2344 = vmatprep.subr.mxu0 %v1851_v48 }
 0x633   : > { %2345 = vmatpush3.msra.mxu0 %v1835_v10 }
 0x634   : > { %2346 = vmatprep.subr.mxu0 %v1850_v11 }
 0x635   : > { %2347 = vmatpush3.msra.mxu0 %v1834_v17 }
 0x636   : > { %2348 = vmatprep.subr.mxu0 %v1849_v21 }
 0x637   : > { %2349 = vmatpush3.msra.mxu0 %v1833_v25 }
 0x638   : > { %2350 = vmatprep.subr.mxu0 %v1848_v27 }
 0x690   : > { %v1596_v29 = vpop.permute.xlu1 %1595 }
 0x691   : > { %2413 = vmatprep.mubr.msk.f32.mxu1 %vm1255_vm8, %v1596_v29  ;;  %v1832_v29 = vld [vmem:[%s3790_s7 + $0x8] sm:$0xff] }
 0x692   : > { %2351 = vmatpush3.msra.mxu0 %v1832_v29 }
 0x694   : > { %v1598_v30 = vpop.permute.xlu0 %1597 }
 0x695   : > { %2414 = vmatmul.mubr.msk.f32.vlgmr.msra.gmra.mxu1 %vm1255_vm8, %v1598_v30  ;;  %v1847_v30 = vld [vmem:[%s3790_s7 + $0x80] sm:$0xff] }
 0x696   : > { %2352 = vmatprep.subr.mxu0 %v1847_v30 }
 0x6e2   : > { %v2396_v31 = vpop.f32.mrf.mxu1 }
 0x6e4   : > { %v1586_v33 = vpop.f32.mrf.mxu1 }
 0x755   : > { %v2415_v34 = vpop.f32.mrf.mxu1 }
 0x757   : > { %v1669_v7 = vpop.f32.mrf.mxu1 }
 0x758   : > { %v2515_v1 = vpack.i.bf16 %v1669_v7, %v2415_v34  ;;  %v1831_v34 = vld [vmem:[%s3790_s7] sm:$0xff] }
 0x759   : > { %2353 = vmatpush3.msra.mxu0 %v1831_v34 }
 0x75a   : > { %2516 = vrot.lane.b32.xlu1 %v2515_v1, %s3845_s0 }
 0x7cc   : > { %v2517_v41 = vpop.permute.xlu1 %2516 }
 0x7cd   : > { %v2519_v42 = vunpack.i.h.bf16 %v2517_v41  ;;  %v2518_v43 = vunpack.i.l.bf16 %v2517_v41 }
 0x7cf   : > { %v3518_v22 = vsel %vm547_vm14, %v1586_v33, %v2519_v42  ;;  %v3521_v44 = vsel %vm547_vm14, %v2396_v31, %v2518_v43 }
 0x7d0   : > { %v2520_v47 = vpack.i.bf16 %v3518_v22, %v3521_v44  ;;  %v1718_v49 = vrot.slane %v3521_v44, 1  ;;  %v1722_v50 = vrot.slane %v3521_v44, 2  ;;  %v1689_v38 = vrot.slane %v3518_v22, 1 }
 0x7d1   : > { %v1693_v51 = vrot.slane %v3518_v22, 2  ;;  %v1726_v53 = vrot.slane %v3521_v44, 3  ;;  %v1697_v55 = vrot.slane %v3518_v22, 3  ;;  %v1730_v59 = vrot.slane %v3521_v44, 4 }
 0x7d2   : > { %2521 = vrot.lane.b32.xlu0 %v2520_v47, %s3838_s17  ;;  %v2525_v18 = vpack.i.bf16 %v1718_v49, %v1722_v50  ;;  %v1701_v63 = vrot.slane %v3518_v22, 4  ;;  %v1734_v3 = vrot.slane %v3521_v44, 5  ;;  %v1705_v9 = vrot.slane %v3518_v22, 5 }
 0x7d3   : > { %v2555_v40 = vpack.i.bf16 %v1689_v38, %v1693_v51  ;;  %v2530_v24 = vpack.i.bf16 %v1722_v50, %v1726_v53  ;;  %v2560_v20 = vpack.i.bf16 %v1693_v51, %v1697_v55  ;;  %v2535_v26 = vpack.i.bf16 %v1726_v53, %v1730_v59 }
 0x7d4   : > { %2526 = vrot.lane.b32.xlu1 %v2525_v18, %s3845_s0  ;;  %v2565_v2 = vpack.i.bf16 %v1697_v55, %v1701_v63  ;;  %v2540_v12 = vpack.i.bf16 %v1730_v59, %v1734_v3  ;;  %v1738_v13 = vrot.slane %v3521_v44, 6  ;;  %v2570_v15 = vpack.i.bf16 %v1701_v63, %v1705_v9 }
 0x7d5   : > { %v1709_v16 = vrot.slane %v3518_v22, 6  ;;  %v1742_v32 = vrot.slane %v3521_v44, 7  ;;  %v1713_v33 = vrot.slane %v3518_v22, 7 }
 0x7d6   : > { %2556 = vrot.lane.b32.xlu0 %v2555_v40, %s3845_s0  ;;  %v2545_v28 = vpack.i.bf16 %v1734_v3, %v1738_v13 }
 0x7d7   : > { %v2575_v31 = vpack.i.bf16 %v1705_v9, %v1709_v16  ;;  %v2550_v7 = vpack.i.bf16 %v1738_v13, %v1742_v32  ;;  %v2580_v1 = vpack.i.bf16 %v1709_v16, %v1713_v33  ;;  %v2585_v0 = vpack.i.bf16 %v1713_v33, %v1742_v32 }
 0x7d8   : > { %2531 = vrot.lane.b32.xlu1 %v2530_v24, %s2759_s16 }
 0x7da   : > { %2561 = vrot.lane.b32.xlu0 %v2560_v20, %s2759_s16  ;;  %s2211_s16 = sshll.u32 %s2855_s25, 7 }
 0x7db   : > { %s3660_s26 = scalar_lea.hbm %s3793_s10, %s2211_s16 }
 0x7dc   : > { %2536 = vrot.lane.b32.xlu1 %v2535_v26, %s2760_s6 }
 0x7de   : > { %2566 = vrot.lane.b32.xlu0 %v2565_v2, %s2760_s6  ;;  %s1947_s6 = sand.u32 1, %s2855_s25  }
 0x7e0   : > { %2541 = vrot.lane.b32.xlu1 %v2540_v12, %s3844_s1 }
 0x7e2   : > { %2571 = vrot.lane.b32.xlu0 %v2570_v15, %s3844_s1  ;;  %s2594_s1 = scalar_lea.vmem %s1989_s3, 128 }
 0x7e3   : > { %p2595_p11 = scmp.ne.s32.totalorder %s1989_s3, %s2594_s1 }
 0x7e4   : > { %2546 = vrot.lane.b32.xlu1 %v2545_v28, %s2761_s4 }
 0x7e5   : > { %p2596_p12 = pnand %p2595_p11, %p2874_p5 }
 0x7e6   : > { %2576 = vrot.lane.b32.xlu0 %v2575_v31, %s2761_s4  ;;  %s3664_s4 = scalar_lea.sflag [#allocation9], %s1947_s6 }
 0x7e7   : > { %p2597_p13 = pneg %p2596_p12 }
 0x7e8   : > { %2551 = vrot.lane.b32.xlu1 %v2550_v7, %s2762_s5 }
 0x7ea   : > { %2581 = vrot.lane.b32.xlu0 %v2580_v1, %s2762_s5 }
 0x7ec   : > { %2586 = vrot.lane.b32.xlu1 %v2585_v0, %s3838_s17  ;;  %s2001_s17 = sshll.u32 %s3456_s20, 4  ;;  %s2763_s20 = smov [#allocation8]   ;;  %s3653_s17 = int_to_ptr.vmem [resolvable:$true] %s2001_s17 }
 0x7ed   : > { %s2598_s15 = sshll.u32 %s2763_s20, 4  ;;  %s2599_s15 = int_to_ptr.vmem [resolvable:$false] %s2598_s15 }
 0x7ee   : > { %s2600_s5 = scalar_lea.vmem %s2599_s15, 256  ;;  %p2601_p0 = scmp.lt.s32.totalorder %s1989_s3, %s2599_s15 }
 0x7ef   : > { %p2602_p1 = scmp.lt.s32.totalorder %s2600_s5, %s2594_s1 }
 0x7f1   : > { %p2603_p2 = por %p2602_p1, %p2601_p0 }
 0x7f3   : > { %p2604_p3 = pnand %p2603_p2, %p2597_p13 }
 0x844   : > { %v2522_v57 = vpop.permute.xlu0 %2521 }
 0x845   : > { %v2523_v41 = vunpack.i.l.bf16 %v2522_v57  ;;  %v2524_v42 = vunpack.i.h.bf16 %v2522_v57 }
 0x846   : > { %v2527_v35 = vpop.permute.xlu1 %2526 }
 0x847   : > { %v2529_v23 = vunpack.i.h.bf16 %v2527_v35  ;;  %v2528_v5 = vunpack.i.l.bf16 %v2527_v35  ;;  %v1815_v50 = vsel %vm547_vm14, %v2523_v41, %v1718_v49  ;;  %v1808_v19 = vsel %vm547_vm14, %v2524_v42, %v1689_v38 }
 0x848   : > { %v2557_v36 = vpop.permute.xlu0 %2556 }
 0x849   : > { %v2559_v46 = vunpack.i.h.bf16 %v2557_v36  ;;  %v2558_v8 = vunpack.i.l.bf16 %v2557_v36  ;;  %v1757_v53 = vsel %vm547_vm14, %v3521_v44, %v2529_v23  ;;  %v1816_v55 = vsel %vm1747_vm9, %v1815_v50, %v2528_v5 }
 0x84a   : > { %v2532_v14 = vpop.permute.xlu1 %2531 }
 0x84b   : > { %v2534_v51 = vunpack.i.h.bf16 %v2532_v14  ;;  %v2533_v52 = vunpack.i.l.bf16 %v2532_v14  ;;  %v1746_v49 = vsel %vm547_vm14, %v3518_v22, %v2559_v46  ;;  %v1809_v58 = vsel %vm1747_vm9, %v1808_v19, %v2558_v8 }
 0x84c   : > { %v2562_v37 = vpop.permute.xlu0 %2561  ;;  %vm1828_vm14 = vcmask 1040384  }
 0x84d   : > { %v2564_v45 = vunpack.i.h.bf16 %v2562_v37  ;;  %v2563_v54 = vunpack.i.l.bf16 %v2562_v37  ;;  %v1758_v38 = vsel %vm1747_vm9, %v1757_v53, %v2534_v51  ;;  %v1817_v20 = vsel %vm1749_vm5, %v1816_v55, %v2533_v52 }
 0x84e   : > { %v2537_v39 = vpop.permute.xlu1 %2536 }
 0x84f   : > { %v2539_v40 = vunpack.i.h.bf16 %v2537_v39  ;;  %v2538_v61 = vunpack.i.l.bf16 %v2537_v39  ;;  %v1748_v26 = vsel %vm1747_vm9, %v1746_v49, %v2564_v45  ;;  %v1810_v3 = vsel %vm1749_vm5, %v1809_v58, %v2563_v54 }
 0x850   : > { %v2567_v43 = vpop.permute.xlu0 %2566 }
 0x851   : > { %v2569_v59 = vunpack.i.h.bf16 %v2567_v43  ;;  %v2568_v60 = vunpack.i.l.bf16 %v2567_v43  ;;  %v1759_v22 = vsel %vm1749_vm5, %v1758_v38, %v2539_v40  ;;  %v1818_v48 = vsel %vm1255_vm8, %v1817_v20, %v2538_v61 }
 0x852   : > { %v2542_v47 = vpop.permute.xlu1 %2541 }
 0x853   : > { %v2543_v62 = vunpack.i.l.bf16 %v2542_v47  ;;  %v2544_v44 = vunpack.i.h.bf16 %v2542_v47  ;;  %v1750_v12 = vsel %vm1749_vm5, %v1748_v26, %v2569_v59  ;;  %v1811_v13 = vsel %vm1255_vm8, %v1810_v3, %v2568_v60 }
 0x854   : > { %v2572_v18 = vpop.permute.xlu0 %2571 }
 0x855   : > { %v2574_v63 = vunpack.i.h.bf16 %v2572_v18  ;;  %v2573_v56 = vunpack.i.l.bf16 %v2572_v18  ;;  %v1819_v15 = vsel %vm1752_vm7, %v1818_v48, %v2543_v62  ;;  %v1760_v17 = vsel %vm1255_vm8, %v1759_v22, %v2544_v44 }
 0x856   : > { %v2547_v24 = vpop.permute.xlu1 %2546 }
 0x857   : > { %v2548_v4 = vunpack.i.l.bf16 %v2547_v24  ;;  %v2549_v2 = vunpack.i.h.bf16 %v2547_v24  ;;  %v1751_v21 = vsel %vm1255_vm8, %v1750_v12, %v2574_v63  ;;  %v1812_v32 = vsel %vm1752_vm7, %v1811_v13, %v2573_v56 }
 0x858   : > { %v2577_v6 = vpop.permute.xlu0 %2576 }
 0x859   : > { %v2579_v9 = vunpack.i.h.bf16 %v2577_v6  ;;  %v2578_v10 = vunpack.i.l.bf16 %v2577_v6  ;;  %v1820_v25 = vsel %vm1754_vm15, %v1819_v15, %v2548_v4  ;;  %v1761_v33 = vsel %vm1752_vm7, %v1760_v17, %v2549_v2 }
 0x85a   : > { %v2552_v11 = vpop.permute.xlu1 %2551 }
 0x85b   : > { %v2553_v16 = vunpack.i.l.bf16 %v2552_v11  ;;  %v2554_v27 = vunpack.i.h.bf16 %v2552_v11  ;;  %v1753_v34 = vsel %vm1752_vm7, %v1751_v21, %v2579_v9  ;;  %v1813_v7 = vsel %vm1754_vm15, %v1812_v32, %v2578_v10 }
 0x85c   : > { %v2582_v28 = vpop.permute.xlu0 %2581 }
 0x85d   : > { %v1821_v29 = vsel %vm720_vm12, %v1820_v25, %v2553_v16  ;;  %v2584_v30 = vunpack.i.h.bf16 %v2582_v28  ;;  %v2583_v31 = vunpack.i.l.bf16 %v2582_v28  ;;  %v1762_v37 = vsel %vm1754_vm15, %v1761_v33, %v2554_v27 }
 0x85e   : > { %v2587_v1 = vpop.permute.xlu1 %2586  ;;  %v1825_v39 = vrot.slane %v1821_v29, 7 }
 0x85f   : > { %v1755_v0 = vsel %vm1754_vm15, %v1753_v34, %v2584_v30  ;;  %v1814_v57 = vsel %vm720_vm12, %v1813_v7, %v2583_v31  ;;  %v2589_v35 = vunpack.i.h.bf16 %v2587_v1  ;;  %v2588_v36 = vunpack.i.l.bf16 %v2587_v1 }
 0x860   : > { %v1824_v14 = vrot.slane %v1814_v57, 7 }
 0x861   : > { %v1756_v41 = vsel %vm720_vm12, %v1755_v0, %v2589_v35  ;;  %v1763_v42 = vsel %vm720_vm12, %v1762_v37, %v2588_v36 }
 0x862   : > { %v1830_v43 = vsel %vm1828_vm14, %v1763_v42, %v1825_v39  ;;  %v1829_v23 = vsel %vm1828_vm14, %v1756_v41, %v1824_v14 }
 0x863   : > { %1934 = vmatprep.mubr.f32.mxu0 %v1830_v43 }
 0x864   : > { %1935 = vmatmul.mubr.f32.vlgmr.msra.gmra.mxu0 %v1829_v23 }
 0x865   : > { %2607 = shalt.err (!%p2604_p3)
}
 0x866   : > { %s2608_s19 = scalar_lea.hbm %s3660_s26, 128  ;;  %s2612_s2 = scalar_lea.hbm %s3793_s10, 256 }
 0x867   : > { %p2609_p4 = scmp.ne.s32.totalorder %s3660_s26, %s2608_s19  ;;  %p2613_p9 = scmp.lt.s32.totalorder %s3660_s26, %s3793_s10 }
 0x868   : > { %p2614_p10 = scmp.lt.s32.totalorder %s2612_s2, %s2608_s19 }
 0x869   : > { %p2610_p7 = pnand %p2609_p4, %p2874_p5 }
 0x86a   : > { %p2615_p11 = por %p2614_p10, %p2613_p9 }
 0x86b   : > { %p2611_p8 = pneg %p2610_p7 }
 0x86d   : > { %p2616_p12 = pnand %p2615_p11, %p2611_p8 }
 0x86f   : > { %2619 = shalt.err (!%p2616_p12)
}
 0x870   : > { %2417 = dma.vmem_to_hbm [thread:$0]  (%p2874_p5), %s1989_s3, 128, %s3660_s26, %s3664_s4  }
 0x871   : > { %s3686_s5 = scalar_lea.hbm %s3792_s9, %s2219_s30  ;;  %s1972_s6 = sshll.u32 %s3220_s28, 4  ;;  %s3689_s6 = int_to_ptr.vmem [resolvable:$true] %s1972_s6 }
 0x872   : > { %s1943_s19 = scalar_lea.sflag [#allocation7], %s3213_s18  ;;  %s2620_s16 = scalar_lea.vmem %s3689_s6, 512 }
 0x873   : > { %p2621_p13 = scmp.ne.s32.totalorder %s3689_s6, %s2620_s16  ;;  %s2764_s2 = smov [#allocation6]  }
 0x874   : > { %s2624_s29 = sshll.u32 %s2764_s2, 4  ;;  %s2625_s29 = int_to_ptr.vmem [resolvable:$false] %s2624_s29 }
 0x875   : > { %p2622_p0 = pnand %p2621_p13, %p2874_p5  ;;  %s2626_s26 = scalar_lea.vmem %s2625_s29, 1024 }
 0x876   : > { %p2627_p2 = scmp.lt.s32.totalorder %s3689_s6, %s2625_s29  ;;  %p2628_p3 = scmp.lt.s32.totalorder %s2626_s26, %s2620_s16 }
 0x877   : > { %p2623_p1 = pneg %p2622_p0 }
 0x878   : > { %p2629_p4 = por %p2628_p3, %p2627_p2 }
 0x87a   : > { %p2630_p7 = pnand %p2629_p4, %p2623_p1 }
 0x87c   : > { %2633 = shalt.err (!%p2630_p7)
}
 0x87d   : > { %s2634_s28 = scalar_lea.hbm %s3686_s5, 512  ;;  %s2638_s20 = scalar_lea.hbm %s3792_s9, 1024 }
 0x87e   : > { %p2635_p8 = scmp.ne.s32.totalorder %s3686_s5, %s2634_s28  ;;  %p2639_p11 = scmp.lt.s32.totalorder %s3686_s5, %s3792_s9 }
 0x87f   : > { %p2640_p12 = scmp.lt.s32.totalorder %s2638_s20, %s2634_s28 }
 0x880   : > { %p2636_p9 = pnand %p2635_p8, %p2874_p5 }
 0x881   : > { %p2641_p13 = por %p2640_p12, %p2639_p11 }
 0x882   : > { %p2637_p10 = pneg %p2636_p9 }
 0x884   : > { %p2642_p0 = pnand %p2641_p13, %p2637_p10 }
 0x886   : > { %2645 = shalt.err (!%p2642_p0)
}
 0x887   : > { %s2765_s16 = smov 256   ;;  %s2220_s2 = sshll.u32 %s2855_s25, 8 }
 0x888   : > { %2416 = dma.vmem_to_hbm [thread:$0]  (%p2874_p5), %s3689_s6, 512, %s3686_s5, %s1943_s19, %s2765_s16, %s2765_s16, %s3845_s0  }
 0x889   : > { %s3719_s28 = scalar_lea.hbm %s3794_s11, %s2220_s2  ;;  %s2646_s3 = scalar_lea.vmem %s3653_s17, 256 }
 0x88a   : > { %p2647_p1 = scmp.ne.s32.totalorder %s3653_s17, %s2646_s3  ;;  %s2766_s30 = smov [#allocation10]  }
 0x88b   : > { %s2650_s20 = sshll.u32 %s2766_s30, 4  ;;  %s2651_s20 = int_to_ptr.vmem [resolvable:$false] %s2650_s20 }
 0x88c   : > { %p2648_p2 = pnand %p2647_p1, %p2874_p5  ;;  %s2652_s1 = scalar_lea.vmem %s2651_s20, 512 }
 0x88d   : > { %p2653_p4 = scmp.lt.s32.totalorder %s3653_s17, %s2651_s20  ;;  %p2654_p7 = scmp.lt.s32.totalorder %s2652_s1, %s2646_s3 }
 0x88e   : > { %p2649_p3 = pneg %p2648_p2 }
 0x88f   : > { %p2655_p8 = por %p2654_p7, %p2653_p4 }
 0x891   : > { %p2656_p9 = pnand %p2655_p8, %p2649_p3 }
 0x893   : > { %2659 = shalt.err (!%p2656_p9)
}
 0x894   : > { %s2660_s0 = scalar_lea.hbm %s3719_s28, 256  ;;  %s2664_s19 = scalar_lea.hbm %s3794_s11, 512 }
 0x895   : > { %p2661_p10 = scmp.ne.s32.totalorder %s3719_s28, %s2660_s0  ;;  %p2665_p13 = scmp.lt.s32.totalorder %s3719_s28, %s3794_s11 }
 0x896   : > { %p2666_p0 = scmp.lt.s32.totalorder %s2664_s19, %s2660_s0 }
 0x897   : > { %p2662_p11 = pnand %p2661_p10, %p2874_p5 }
 0x898   : > { %p2667_p1 = por %p2666_p0, %p2665_p13 }
 0x899   : > { %p2663_p12 = pneg %p2662_p11 }
 0x89b   : > { %p2668_p2 = pnand %p2667_p1, %p2663_p12 }
 0x89d   : > { %2671 = shalt.err (!%p2668_p2)
}
 0x89e   : > { %s2767_s2 = smov 128   ;;  %s3846_s29 = smov 8   ;;  %v2203_v46 = vld [vmem:[%s3791_s8] ss:$0 sm:$0xff]  ;;  %vm1940_vm12 = vcmask 74752  }
 0x89f   : > { %2418 = dma.vmem_to_hbm [thread:$0]  (%p2874_p5), %s3653_s17, 256, %s3719_s28, %s3664_s4, %s2767_s2, %s2767_s2, %s3846_s29  }
 0x8a0   : > { %s2176_s26 = sshll.u32 %s3213_s18, 1  ;;  %s2214_s20 = sshll.u32 %s2855_s25, 5 }
 0x8a1   : > { %s437_s1 = scalar_lea.vmem [#allocation11], %s2176_s26  ;;  %s2015_s19 = scalar_lea.hbm %s3795_s12, %s2214_s20 }
 0x8a2   : > { %s2017_s0 = sshll.u32 %s437_s1, 4  ;;  %s1958_s17 = scalar_lea.sflag [#allocation12], %s3213_s18  ;;  %s2018_s0 = int_to_ptr.vmem [resolvable:$true] %s2017_s0 }
 0x8a3   : > { %s2672_s4 = scalar_lea.vmem %s2018_s0, 32  ;;  %s2768_s28 = smov [#allocation11]  }
 0x8a4   : > { %p2673_p3 = scmp.ne.s32.totalorder %s2018_s0, %s2672_s4  ;;  %s2676_s15 = sshll.u32 %s2768_s28, 4  ;;  %s2677_s15 = int_to_ptr.vmem [resolvable:$false] %s2676_s15 }
 0x8a5   : > { %s2678_s25 = scalar_lea.vmem %s2677_s15, 64  ;;  %p2679_p8 = scmp.lt.s32.totalorder %s2018_s0, %s2677_s15 }
 0x8a6   : > { %p2674_p4 = pnand %p2673_p3, %p2874_p5  ;;  %p2680_p9 = scmp.lt.s32.totalorder %s2678_s25, %s2672_s4 }
 0x8a8   : > { %p2675_p7 = pneg %p2674_p4  ;;  %p2681_p10 = por %p2680_p9, %p2679_p8 }
 0x8aa   : > { %p2682_p11 = pnand %p2681_p10, %p2675_p7 }
 0x924   : > { %v2354_v5 = vpop.f32.mrf.mxu0 }
 0x926   : > { %v2355_v8 = vpop.f32.mrf.mxu0 }
 0x927   : > { %v2356_v47 = vadd.f32 %v2355_v8, %v2354_v5 }
 0x929   : > { %v1937_v50 = vadd.f32 %v2356_v47, %v2203_v46 }
 0x92b   : > { %1941 = vst.msk [vmem:[%s437_s1] sm:$0x3] %vm1940_vm12, %v1937_v50 }
 0x92c   : > { %2685 = shalt.err (!%p2682_p11)
}
 0x92d   : > { %s2686_s16 = scalar_lea.hbm %s2015_s19, 32  ;;  %s2690_s29 = scalar_lea.hbm %s3795_s12, 64 }
 0x92e   : > { %p2687_p12 = scmp.ne.s32.totalorder %s2015_s19, %s2686_s16  ;;  %p2691_p1 = scmp.lt.s32.totalorder %s2015_s19, %s3795_s12 }
 0x92f   : > { %p2692_p2 = scmp.lt.s32.totalorder %s2690_s29, %s2686_s16 }
 0x930   : > { %p2688_p13 = pnand %p2687_p12, %p2874_p5 }
 0x931   : > { %p2693_p3 = por %p2692_p2, %p2691_p1 }
 0x932   : > { %p2689_p0 = pneg %p2688_p13 }
 0x934   : > { %p2694_p4 = pnand %p2693_p3, %p2689_p0 }
 0x936   : > { %2697 = shalt.err (!%p2694_p4)
}
 0x937   : > { %2419 = dma.vmem_to_hbm [thread:$0]  (%p2874_p5), %s2018_s0, 32, %s2015_s19, %s1958_s17  }
 0x938 PF: > { %p2437_p7 = scmp.ge.s32.totalorder %s2740_s24, 2  ;;  %s2029_s30 = sand.u32 1, %s2728_s21  }
 0x939   : > { %s2030_s20 = scalar_lea.sflag [#allocation7], %s2029_s30 }
 0x93a   : > { %p2425_p8 = pnand %p2437_p7, %p2878_p6 }
 0x93c   : > { %p2426_p9 = pneg %p2425_p8 }
 0x93e   : > { %2715 = dma.done.wait (%p2426_p9), %s2030_s20, 512  }
 0x93f   : > { %2717 = vsyncadd (%p2426_p9), %s2030_s20, 4294966784  ;;  %s3847_s1 = sadd.s32 4294967294, %s2740_s24  }
 0x940   : > { %s2038_s5 = sand.u32 1, %s3847_s1  }
 0x941   : > { %s2039_s6 = scalar_lea.sflag [#allocation9], %s2038_s5 }
 0x942   : > { %2719 = dma.done.wait (%p2426_p9), %s2039_s6, 384  }
 0x943   : > { %2721 = vsyncadd (%p2426_p9), %s2039_s6, 4294966912  ;;  %s2057_s13 = scalar_lea.sflag [#allocation12], %s2029_s30 }
 0x944   : > { %2723 = dma.done.wait (%p2426_p9), %s2057_s13, 32  }
 0x945   : > { %2725 = vsyncadd (%p2426_p9), %s2057_s13, 4294967264  ;;  %s3848_s0 = sld [smem:[#allocation16_spill]]  ;;  %p29_p5 = scmp.ge.s32.totalorder %s2859_s27, 4  }
 0x946   : > { %s3849_s21 = smov %s2732_s22  ;;  %s3850_s22 = smov %s2736_s23 }
 0x947   : > { %s3852_s24 = smov %s2859_s27  ;;  %31 = sbr.rel (!%p29_p5) target bundleno = 15 (0xf), region = 142 }
 0x94b   : > { %s3851_s23 = smov %s3848_s0 }
 0x94c   :  { %2062 = vsyncpa [#allocation7], 1 }
 0x94d   :  { %2064 = vsyncpa [#allocation7 + $0x1], 1 }
 0x94e   :  { %2065 = vsyncpa [#allocation9], 1 }
 0x94f   :  { %2067 = vsyncpa [#allocation9 + $0x1], 1 }
 0x950   :  { %2068 = vsyncpa [#allocation12], 1 }
 0x951   :  { %2070 = vsyncpa [#allocation12 + $0x1], 1 }

</bundles_post_ra>
